<compile_context>
chip_gen: v7x
topology: tpu7x:2x2x1
jax: 0.10.0
libtpu: 0.0.40
codegen_flags: <defaults>
</compile_context>

<pallas_src>
import jax
import jax.numpy as jnp
from jax.experimental import pallas as pl
from jax.experimental.pallas import tpu as pltpu


ONE_HOT_MAX_ITEMS = 2048  # use the one-hot MXU gather up to this many rows


def _item2vec_onehot_kernel(idx_ref, table_ref, o_ref):
    # idx_ref:   (1, 2*TB) int32 — [target_tile | context_tile]
    # table_ref: (item_len, D) embedding table, resident in VMEM (native dtype)
    # o_ref:     (1, TB) float32, lane-dense output tile
    two_tb = idx_ref.shape[1]
    tb = two_tb // 2
    item_len = table_ref.shape[0]

    idx = idx_ref[0, :]                                              # (2*TB,)
    item_iota = jax.lax.broadcasted_iota(jnp.int32, (two_tb, item_len), 1)
    onehot = (item_iota == idx[:, None]).astype(table_ref.dtype)     # (2*TB, L)

    # One fused MXU gather for both target and context rows.  HIGHEST keeps
    # the multi-pass (exact) f32 path so the selection is bit-faithful.
    gathered = jnp.dot(onehot, table_ref[...],
                       preferred_element_type=jnp.float32,
                       precision=jax.lax.Precision.HIGHEST)          # (2*TB, D)

    t_emb = gathered[:tb, :]
    c_emb = gathered[tb:, :]
    dots = jnp.sum(t_emb * c_emb, axis=-1)                           # (TB,) f32
    o_ref[0, :] = jax.nn.sigmoid(dots)


def _item2vec_take_kernel(idx_ref, table_ref, o_ref):
    # Fallback for larger tables: row gather on the VMEM-resident table.
    # Gather FIRST, then cast only the gathered rows (no-op for f32 tables).
    two_tb = idx_ref.shape[1]
    tb = two_tb // 2
    idx = idx_ref[0, :]
    emb = jnp.take(table_ref[...], idx, axis=0, mode="clip").astype(jnp.float32)
    t_emb = emb[:tb, :]
    c_emb = emb[tb:, :]
    dots = jnp.sum(t_emb * c_emb, axis=-1)
    o_ref[0, :] = jax.nn.sigmoid(dots)


def _roundup(x, m):
    return ((x + m - 1) // m) * m


def _padded_table_bytes(item_len, embed_dim, dtype):
    # Real VMEM footprint of the resident table: sublane- and lane-padded.
    itemsize = jnp.dtype(dtype).itemsize
    sublane = 8 * max(1, 4 // itemsize)          # 8 (f32), 16 (bf16), 32 (i8)
    return _roundup(item_len, sublane) * _roundup(embed_dim, 128) * itemsize


def _vmem_capacity_bytes():
    # Generation-aware physical VMEM; fall back to the smallest (v7x per-TC).
    try:
        return int(pltpu.get_tpu_info().vmem_capacity_bytes)
    except Exception:
        return 64 * 1024 * 1024


def item2vec_forward(embedding, target_i, context_j, *, batch_tile=None):
    """embedding: (item_len, embed_dim); target_i, context_j: (B,) int → (B,) f32."""
    item_len, embed_dim = embedding.shape
    B = int(target_i.shape[0])

    # Batch tile: multiple of 128 (lane-dense output); per-step compute is tiny
    # so prefer fewer, larger grid steps.
    if batch_tile is None:
        batch_tile = min(1024, max(128, _roundup(B, 128)))
    tb = int(batch_tile)
    assert tb % 128 == 0

    num_tiles = pl.cdiv(B, tb)
    b_pad = num_tiles * tb

    # Stack [target | context] into one (num_tiles, 2*tb) index array so the
    # kernel does a single fused gather.  Pad with 0 (a valid row); padded
    # outputs are sliced off below.
    ti = jnp.zeros((b_pad,), jnp.int32).at[:B].set(target_i.astype(jnp.int32))
    ci = jnp.zeros((b_pad,), jnp.int32).at[:B].set(context_j.astype(jnp.int32))
    idx = jnp.concatenate(
        [ti.reshape(num_tiles, tb), ci.reshape(num_tiles, tb)], axis=1)

    use_onehot = item_len <= ONE_HOT_MAX_ITEMS
    kernel = _item2vec_onehot_kernel if use_onehot else _item2vec_take_kernel

    # VMEM budget: padded resident table + double-buffered idx/out tiles +
    # gathered/one-hot intermediates + headroom, capped below physical VMEM.
    itemsize = jnp.dtype(embedding.dtype).itemsize
    table_bytes = _padded_table_bytes(item_len, embed_dim, embedding.dtype)
    budget_cap = int(_vmem_capacity_bytes() * 0.80)
    d_pad = _roundup(embed_dim, 128)
    tile_io_bytes = 2 * (2 * tb * 4 + tb * 4)        # idx + out tiles, 2 buffers
    interm_bytes = 2 * tb * d_pad * 4                # gathered (2*TB, D) f32
    if use_onehot:
        interm_bytes += 2 * tb * _roundup(item_len, 128) * max(itemsize, 4)
    needed = table_bytes + tile_io_bytes + interm_bytes + (4 << 20)
    vmem_limit = int(min(budget_cap, max(16 << 20, needed)))
    # TODO(synk): if table_bytes > budget_cap, switch to an HBM-resident table
    # with a manual double-buffered DMA row gather instead of failing to fit.

    out = pl.pallas_call(
        kernel,
        out_shape=jax.ShapeDtypeStruct((num_tiles, tb), jnp.float32),
        grid=(num_tiles,),
        in_specs=[
            pl.BlockSpec((1, 2 * tb), lambda t: (t, 0)),           # stacked indices
            pl.BlockSpec(memory_space=pltpu.MemorySpace.VMEM),     # whole table, once
        ],
        out_specs=pl.BlockSpec((1, tb), lambda t: (t, 0)),
        compiler_params=pltpu.CompilerParams(
            dimension_semantics=("parallel",),
            vmem_limit_bytes=vmem_limit),
    )(idx, embedding)

    return out.reshape(-1)[:B]   # matches PyTorch .view(-1)


def _reference(embedding, target_i, context_j):
    t = embedding[target_i]
    c = embedding[context_j]
    return jax.nn.sigmoid(jnp.sum(t * c, axis=1)).reshape(-1)


if __name__ == "__main__":
    # Small deterministic setup consistent with Item2Vec.__init__:
    item_len, embed_dim, batch = 64, 32, 8

    key = jax.random.PRNGKey(0)
    k_emb, k_t, k_c = jax.random.split(key, 3)

    # nn.Embedding default init: N(0, 1)
    embedding = jax.random.normal(k_emb, (item_len, embed_dim), jnp.float32)
    target_i = jax.random.randint(k_t, (batch,), 0, item_len, jnp.int32)
    context_j = jax.random.randint(k_c, (batch,), 0, item_len, jnp.int32)

    out = item2vec_forward(embedding, target_i, context_j)
    out = jax.block_until_ready(out)

    ref = _reference(embedding, target_i, context_j)
    assert out.shape == (batch,)
    assert out.dtype == jnp.float32
    assert jnp.allclose(out, ref, atol=1e-4, rtol=1e-4)

    print("KERNEL_OK")
</pallas_src>

<mosaic_0001>
module attributes {stable_mosaic.version = 11 : i64} {
  func.func @_item2vec_onehot_kernel(%arg0: i32, %arg1: memref<1x256xi32, #tpu.memory_space<vmem>>, %arg2: memref<64x32xf32, #tpu.memory_space<vmem>>, %arg3: memref<1x128xf32, #tpu.memory_space<vmem>>) attributes {dimension_semantics = [#tpu.dimension_semantics<parallel>], iteration_bounds = array<i64: 1>, scalar_prefetch = 0 : i64, scratch_operands = 0 : i64, tpu.core_type = #tpu.core_type<tc>, window_params = [{transform_indices = @transform_0, window_bounds = array<i64: 1, 256>}, {pipeline_mode = #tpu.pipeline_mode<synchronous>, transform_indices = @transform_1, window_bounds = array<i64: 64, 32>}, {transform_indices = @transform_2, window_bounds = array<i64: 1, 128>}]} {
    %c0 = arith.constant 0 : index
    %c0_0 = arith.constant 0 : index
    %0 = vector.load %arg1[%c0, %c0_0] : memref<1x256xi32, #tpu.memory_space<vmem>>, vector<1x256xi32>
    %1 = vector.shape_cast %0 : vector<1x256xi32> to vector<256xi32>
    %2 = tpu.iota {dimensions = array<i32: 1>} : vector<256x64xi32>
    %3 = vector.shape_cast %1 : vector<256xi32> to vector<256x1xi32>
    %4 = vector.broadcast %3 : vector<256x1xi32> to vector<256x64xi32>
    %5 = arith.cmpi eq, %2, %4 : vector<256x64xi32>
    %6 = arith.extui %5 : vector<256x64xi1> to vector<256x64xi32>
    %7 = arith.sitofp %6 : vector<256x64xi32> to vector<256x64xf32>
    %c0_1 = arith.constant 0 : index
    %c0_2 = arith.constant 0 : index
    %8 = vector.load %arg2[%c0_1, %c0_2] : memref<64x32xf32, #tpu.memory_space<vmem>>, vector<64x32xf32>
    %cst = arith.constant dense<0.000000e+00> : vector<256x32xf32>
    %9 = tpu.matmul %7, %8, %cst {dimension_numbers = #tpu.dot_dimension_numbers<[1], [0], [0], [1], [0, 0, 1, 1], [], []>, precision = #tpu.contract_precision<fp32>} : vector<256x64xf32>, vector<64x32xf32>, vector<256x32xf32> -> vector<256x32xf32>
    %10 = vector.extract_strided_slice %9 {offsets = [0, 0], sizes = [128, 32], strides = [1, 1]} : vector<256x32xf32> to vector<128x32xf32>
    %11 = vector.extract_strided_slice %9 {offsets = [128, 0], sizes = [128, 32], strides = [1, 1]} : vector<256x32xf32> to vector<128x32xf32>
    %12 = arith.mulf %10, %11 : vector<128x32xf32>
    %cst_3 = arith.constant dense<0.000000e+00> : vector<128xf32>
    %13 = vector.multi_reduction <add>, %12, %cst_3 [1] : vector<128x32xf32> to vector<128xf32>
    %14 = arith.negf %13 : vector<128xf32>
    %15 = math.exp %14 : vector<128xf32>
    %cst_4 = arith.constant 1.000000e+00 : f32
    %16 = vector.broadcast %cst_4 : f32 to vector<128xf32>
    %17 = arith.addf %16, %15 : vector<128xf32>
    %18 = arith.divf %16, %17 : vector<128xf32>
    %c0_5 = arith.constant 0 : index
    %c0_6 = arith.constant 0 : index
    %19 = vector.load %arg3[%c0_5, %c0_6] : memref<1x128xf32, #tpu.memory_space<vmem>>, vector<1x128xf32>
    %20 = vector.shape_cast %19 : vector<1x128xf32> to vector<128xf32>
    %21 = vector.shape_cast %18 : vector<128xf32> to vector<1x128xf32>
    tpu.vector_store %arg3[%c0_5, %c0_6], %21 {strides = array<i32>} : memref<1x128xf32, #tpu.memory_space<vmem>>, vector<1x128xf32>,
    return
  }
  func.func @transform_0(%arg0: i32) -> (i32, i32) {
    %c0_i32 = arith.constant 0 : i32
    %c0_i32_0 = arith.constant 0 : i32
    return %arg0, %c0_i32 : i32, i32
  }
  func.func @transform_1(%arg0: i32) -> (i32, i32) {
    %c0_i32 = arith.constant 0 : i32
    %c0_i32_0 = arith.constant 0 : i32
    %c0_i32_1 = arith.constant 0 : i32
    return %c0_i32, %c0_i32_0 : i32, i32
  }
  func.func @transform_2(%arg0: i32) -> (i32, i32) {
    %c0_i32 = arith.constant 0 : i32
    %c0_i32_0 = arith.constant 0 : i32
    return %arg0, %c0_i32 : i32, i32
  }
}

</mosaic_0001>

<bundles_post_ra>
// kernel: tpu_custom_call.1
= control target key start
LH: loop header
LB: loop body
LE: loop exit
PB: predicated region body
PF: predicated region fallthrough
CT: control target
= control target key end

     0   :  { %v13_v0 = vlaneseq  ;;  %s4471_s0 = inlined_call_operand.vmem [shape: s32[1,256], index: 0, kind: input, shape index: {}]   ;;  %s4472_s1 = inlined_call_operand.vmem [shape: f32[64,32], index: 1, kind: input, shape index: {}]   ;;  %s4473_s2 = inlined_call_operand.hbm [shape: f32[1,128], index: 2, kind: output, shape index: {}]  }
   0x1   :  { %v253_v1 = vld [vmem:[%s4472_s1] sm:$0xff]  ;;  %v254_v2 = vld [vmem:[%s4472_s1 + $0x8] sm:$0xff]  ;;  %v255_v5 = vld [vmem:[%s4472_s1 + $0x10] sm:$0xff] }
   0x2   :  { %v359_v3 = vand.u32 4294901760, %v253_v1  ;;  %v362_v4 = vand.u32 4294901760, %v254_v2  ;;  %v256_v6 = vld [vmem:[%s4472_s1 + $0x18] sm:$0xff]  ;;  %v3676_v7 = vld [vmem:[%s4472_s1 + $0x20] sm:$0xff]  ;;  %v3679_v8 = vshrl.u32 %v13_v0, 7  ;;  %v365_v9 = vand.u32 4294901760, %v255_v5 }
   0x3   :  { %v368_v10 = vand.u32 4294901760, %v256_v6  ;;  %v3684_v11 = vld [vmem:[%s4472_s1 + $0x28] sm:$0xff]  ;;  %v3689_v12 = vld [vmem:[%s4471_s0] sm:$0x3] }
   0x4   :  { %4502 = vst [vmem:[#allocation5_spill] sm:$0xff] %v3679_v8  ;;  %v3691_v13 = vpack.c.bf16 %v362_v4, %v359_v3 }
   0x5   :  { %7 = vsyncpa [#allocation3], 0  ;;  %v3694_v14 = vsub.s32 0, %v3679_v8  ;;  %v3696_v15 = vpack.c.bf16 %v368_v10, %v365_v9  ;;  %v371_v16 = vand.u32 4294901760, %v3676_v7  ;;  %v374_v17 = vand.u32 4294901760, %v3684_v11  ;;  %v3705_v18 = vld [vmem:[%s4472_s1 + $0x30] sm:$0xff] }
   0x6   :  { %3347 = vmatprep.subr.bf16.mxu0 %v3691_v13  ;;  %3299 = vmatprep.subr.bf16.mxu1 %v3691_v13  ;;  %v3710_v19 = vld [vmem:[%s4472_s1 + $0x38] sm:$0xff]  ;;  %v377_v23 = vand.u32 4294901760, %v3705_v18  ;;  %v3737_v26 = vsub.f32 %v253_v1, %v359_v3  ;;  %v3739_v27 = vsub.f32 %v254_v2, %v362_v4  ;;  %v767_v36 = vsub.f32 %v255_v5, %v365_v9  ;;  %s3645_s1 = smov [#allocation2]  }
   0x7   :  { %v18_v20 = vrot.slane %v3689_v12, %v3694_v14  ;;  %3349 = vmatpush3.bf16.msra.mxu0 %v3691_v13  ;;  %3301 = vmatpush3.bf16.msra.mxu1 %v3691_v13  ;;  %v3723_v22 = vpack.c.bf16 %v374_v17, %v371_v16  ;;  %v380_v24 = vand.u32 4294901760, %v3710_v19  ;;  %v774_v37 = vsub.f32 %v256_v6, %v368_v10  ;;  %s2522_s26 = sshll.u32 %s3645_s1, 4  ;;  %s2523_s26 = int_to_ptr.vmem [resolvable:$true] %s2522_s26 }
   0x8   :  { %3351 = vmatprep.subr.bf16.mxu0 %v3696_v15  ;;  %3303 = vmatprep.subr.bf16.mxu1 %v3696_v15  ;;  %v754_v28 = vand.u32 4294901760, %v3737_v26  ;;  %v761_v29 = vand.u32 4294901760, %v3739_v27  ;;  %v21_v38 = vsub.s32 1, %v3679_v8  ;;  %v768_v39 = vand.u32 4294901760, %v767_v36  ;;  %s3620_s27 = scalar_lea.vmem %s2523_s26, 16  ;;  %s3624_s28 = scalar_lea.vmem %s2523_s26, 32 }
   0x9   :  { %v26_v21 = vrot.slane %v18_v20, %v3694_v14  ;;  %v3735_v25 = vpack.c.bf16 %v380_v24, %v377_v23  ;;  %v775_v40 = vand.u32 4294901760, %v774_v37  ;;  %v781_v49 = vsub.f32 %v3676_v7, %v371_v16  ;;  %p3621_p0 = scmp.ne.s32.totalorder %s2523_s26, %s3620_s27  ;;  %p3625_p1 = scmp.lt.s32.totalorder %s2523_s26, %s2523_s26 }
   0xa   :  { %v755_v30 = vsub.f32 %v3737_v26, %v754_v28  ;;  %v762_v31 = vsub.f32 %v3739_v27, %v761_v29  ;;  %v3749_v32 = vpack.c.bf16 %v761_v29, %v754_v28  ;;  %v769_v41 = vsub.f32 %v767_v36, %v768_v39  ;;  %p3626_p2 = scmp.lt.s32.totalorder %s3624_s28, %s3620_s27 }
   0xb   :  { %28 = vbcast.lane.b32.xlu0 %v26_v21, 256  ;;  %36 = vbcast.lane.b32.xlu1 %v26_v21, 272  ;;  %v776_v42 = vsub.f32 %v774_v37, %v775_v40  ;;  %v3758_v43 = vpack.c.bf16 %v775_v40, %v768_v39  ;;  %v22_v44 = vrot.slane %v3689_v12, %v21_v38  ;;  %v782_v51 = vand.u32 4294901760, %v781_v49 }
   0xc   :  { %3353 = vmatpush3.bf16.msra.mxu0 %v3696_v15  ;;  %3305 = vmatpush3.bf16.msra.mxu1 %v3696_v15  ;;  %v756_v33 = vand.u32 4294901760, %v755_v30  ;;  %v763_v34 = vand.u32 4294901760, %v762_v31  ;;  %v770_v45 = vand.u32 4294901760, %v769_v41  ;;  %v788_v50 = vsub.f32 %v3684_v11, %v374_v17  ;;  %p3627_p3 = por %p3626_p2, %p3625_p1 }
   0xd   :  { %3355 = vmatprep.subr.bf16.mxu0 %v3723_v22  ;;  %3307 = vmatprep.subr.bf16.mxu1 %v3723_v22  ;;  %v777_v46 = vand.u32 4294901760, %v776_v42  ;;  %v93_v48 = vrot.slane %v22_v44, %v3694_v14  ;;  %v783_v53 = vsub.f32 %v781_v49, %v782_v51  ;;  %v795_v59 = vsub.f32 %v3705_v18, %v377_v23 }
   0xe   :  { %v3753_v35 = vpack.c.bf16 %v763_v34, %v756_v33  ;;  %v789_v52 = vand.u32 4294901760, %v788_v50  ;;  %v802_v60 = vsub.f32 %v3710_v19, %v380_v24  ;;  %v3786_v6 = vpack.c.bf16 %v3739_v27, %v3737_v26  ;;  %p3628_p4 = pnand %p3627_p3, %p3621_p0 }
   0xf   :  { %32 = vbcast.lane.b32.xlu0 %v26_v21, 264  ;;  %40 = vbcast.lane.b32.xlu1 %v26_v21, 280  ;;  %v3761_v47 = vpack.c.bf16 %v777_v46, %v770_v45  ;;  %v784_v56 = vand.u32 4294901760, %v783_v53  ;;  %v796_v61 = vand.u32 4294901760, %v795_v59  ;;  %v3788_v7 = vpack.c.bf16 %v774_v37, %v767_v36 }
  0x10   :  { %3357 = vmatpush3.bf16.msra.mxu0 %v3723_v22  ;;  %3309 = vmatpush3.bf16.msra.mxu1 %v3723_v22  ;;  %v790_v54 = vsub.f32 %v788_v50, %v789_v52  ;;  %v3770_v55 = vpack.c.bf16 %v789_v52, %v782_v51  ;;  %v803_v62 = vand.u32 4294901760, %v802_v60  ;;  %v3790_v9 = vpack.c.bf16 %v788_v50, %v781_v49 }
  0x11   :  { %3359 = vmatprep.subr.bf16.mxu0 %v3735_v25  ;;  %3311 = vmatprep.subr.bf16.mxu1 %v3735_v25  ;;  %v797_v63 = vsub.f32 %v795_v59, %v796_v61  ;;  %v3793_v10 = vand.u32 127, %v13_v0  ;;  %v3795_v11 = vpack.c.bf16 %v802_v60, %v795_v59  ;;  %vm261_vm0 = vcmask 523264  }
  0x12   :  { %v791_v57 = vand.u32 4294901760, %v790_v54  ;;  %v804_v1 = vsub.f32 %v802_v60, %v803_v62  ;;  %v3780_v2 = vpack.c.bf16 %v803_v62, %v796_v61  ;;  %v4476_v16 = vmov 0.0  }
  0x13   :  { %44 = vbcast.lane.b32.xlu0 %v26_v21, 288  ;;  %48 = vbcast.lane.b32.xlu1 %v26_v21, 296  ;;  %v798_v3 = vand.u32 4294901760, %v797_v63  ;;  %4503 = vst [vmem:[#allocation6_spill] sm:$0xff] %v3793_v10 }
  0x14   :  { %3361 = vmatpush3.bf16.msra.mxu0 %v3735_v25  ;;  %3313 = vmatpush3.bf16.msra.mxu1 %v3735_v25  ;;  %v3772_v58 = vpack.c.bf16 %v791_v57, %v784_v56  ;;  %v805_v4 = vand.u32 4294901760, %v804_v1 }
  0x15   :  { %3363 = vmatprep.subr.bf16.mxu0 %v3749_v32  ;;  %3315 = vmatprep.subr.bf16.mxu1 %v3753_v35 }
  0x16   :  { %v3782_v5 = vpack.c.bf16 %v805_v4, %v798_v3 }
  0x17   :  { %52 = vbcast.lane.b32.xlu0 %v26_v21, 304  ;;  %56 = vbcast.lane.b32.xlu1 %v26_v21, 312 }
  0x1b   :  { %60 = vbcast.lane.b32.xlu0 %v26_v21, 320  ;;  %64 = vbcast.lane.b32.xlu1 %v26_v21, 328 }
  0x1f   :  { %68 = vbcast.lane.b32.xlu0 %v26_v21, 336  ;;  %72 = vbcast.lane.b32.xlu1 %v26_v21, 344 }
  0x23   :  { %76 = vbcast.lane.b32.xlu0 %v26_v21, 352  ;;  %80 = vbcast.lane.b32.xlu1 %v26_v21, 360 }
  0x27   :  { %84 = vbcast.lane.b32.xlu0 %v26_v21, 368  ;;  %88 = vbcast.lane.b32.xlu1 %v26_v21, 376 }
  0x2b   :  { %95 = vbcast.lane.b32.xlu0 %v93_v48, 256  ;;  %99 = vbcast.lane.b32.xlu1 %v93_v48, 264 }
  0x2f   :  { %103 = vbcast.lane.b32.xlu0 %v93_v48, 272  ;;  %107 = vbcast.lane.b32.xlu1 %v93_v48, 280 }
  0x33   :  { %111 = vbcast.lane.b32.xlu0 %v93_v48, 288  ;;  %115 = vbcast.lane.b32.xlu1 %v93_v48, 296 }
  0x37   :  { %119 = vbcast.lane.b32.xlu0 %v93_v48, 304  ;;  %123 = vbcast.lane.b32.xlu1 %v93_v48, 312 }
  0x3b   :  { %127 = vbcast.lane.b32.xlu0 %v93_v48, 320  ;;  %131 = vbcast.lane.b32.xlu1 %v93_v48, 328 }
  0x3f   :  { %135 = vbcast.lane.b32.xlu0 %v93_v48, 336  ;;  %139 = vbcast.lane.b32.xlu1 %v93_v48, 344 }
  0x43   :  { %143 = vbcast.lane.b32.xlu0 %v93_v48, 352  ;;  %147 = vbcast.lane.b32.xlu1 %v93_v48, 360 }
  0x47   :  { %151 = vbcast.lane.b32.xlu0 %v93_v48, 368  ;;  %155 = vbcast.lane.b32.xlu1 %v93_v48, 376 }
  0x7d   :  { %v29_v12 = vpop.permute.xlu0 %28  ;;  %v37_v14 = vpop.permute.xlu1 %36 }
  0x7e   :  { %vm157_vm1 = vcmp.eq.s32.totalorder %v3793_v10, %v29_v12  ;;  %vm159_vm2 = vcmp.eq.s32.totalorder %v3793_v10, %v37_v14 }
  0x7f   :  { %v3800_v17 = vsel %vm157_vm1, 1.0, %v4476_v16  ;;  %v3803_v18 = vsel %vm159_vm2, 1.0, %v4476_v16 }
  0x80   :  { %v263_v0 = vsel %vm261_vm0, %v3800_v17, 0  ;;  %v269_v19 = vsel %vm261_vm0, %v3803_v18, 0 }
  0x81   :  { %v3809_v20 = vsub.f32 %v263_v0, %v263_v0  ;;  %v3811_v21 = vsub.f32 %v269_v19, %v269_v19  ;;  %v33_v23 = vpop.permute.xlu0 %32  ;;  %v41_v24 = vpop.permute.xlu1 %40 }
  0x82   :  { %vm158_vm3 = vcmp.eq.s32.totalorder %v3793_v10, %v33_v23  ;;  %vm160_vm4 = vcmp.eq.s32.totalorder %v3793_v10, %v41_v24 }
  0x83   :  { %v3816_v26 = vsel %vm158_vm3, 1.0, %v4476_v16  ;;  %v3819_v27 = vsel %vm160_vm4, 1.0, %v4476_v16  ;;  %v433_v28 = vand.u32 4294901760, %v3809_v20  ;;  %v453_v31 = vand.u32 4294901760, %v3811_v21 }
  0x84   :  { %v266_v29 = vsel %vm261_vm0, %v3816_v26, 0  ;;  %v272_v30 = vsel %vm261_vm0, %v3819_v27, 0 }
  0x85   :  { %v3827_v33 = vsub.f32 %v266_v29, %v266_v29  ;;  %v3829_v34 = vsub.f32 %v272_v30, %v272_v30  ;;  %3122 = vmatprep.mubr.f32.mxu0 %v433_v28  ;;  %v45_v36 = vpop.permute.xlu0 %44  ;;  %v49_v37 = vpop.permute.xlu1 %48  ;;  %v434_v38 = vsub.f32 %v3809_v20, %v433_v28  ;;  %v454_v48 = vsub.f32 %v3811_v21, %v453_v31 }
  0x86   :  { %vm161_vm5 = vcmp.eq.s32.totalorder %v3793_v10, %v45_v36  ;;  %vm162_vm6 = vcmp.eq.s32.totalorder %v3793_v10, %v49_v37 }
  0x87   :  { %v3835_v39 = vsel %vm161_vm5, 1.0, %v4476_v16  ;;  %v3838_v40 = vsel %vm162_vm6, 1.0, %v4476_v16  ;;  %v435_v41 = vand.u32 4294901760, %v434_v38  ;;  %v443_v42 = vand.u32 4294901760, %v3827_v33 }
  0x88   :  { %v275_v44 = vsel %vm261_vm0, %v3835_v39, 0  ;;  %v278_v45 = vsel %vm261_vm0, %v3838_v40, 0  ;;  %v463_v46 = vand.u32 4294901760, %v3829_v34 }
  0x89   :  { %v3847_v49 = vsub.f32 %v275_v44, %v275_v44  ;;  %v3849_v50 = vsub.f32 %v278_v45, %v278_v45  ;;  %2930 = vmatprep.mubr.f32.mxu1 %v435_v41  ;;  %3123 = vmatmul.mubr.f32.vlgmr.msra.gmra.mrb[0].mxu0 %v443_v42  ;;  %v53_v51 = vpop.permute.xlu0 %52  ;;  %v57_v52 = vpop.permute.xlu1 %56  ;;  %v444_v53 = vsub.f32 %v3827_v33, %v443_v42 }
  0x8a   :  { %3125 = vmatprep.mubr.f32.mxu0 %v453_v31  ;;  %vm163_vm7 = vcmp.eq.s32.totalorder %v3793_v10, %v53_v51  ;;  %vm164_vm8 = vcmp.eq.s32.totalorder %v3793_v10, %v57_v52  ;;  %3365 = vmatpush3.bf16.msra.mxu0 %v3749_v32  ;;  %v464_v54 = vsub.f32 %v3829_v34, %v463_v46  ;;  %v455_v32 = vand.u32 4294901760, %v454_v48 }
  0x8b   :  { %v3857_v56 = vsel %vm163_vm7, 1.0, %v4476_v16  ;;  %v3860_v57 = vsel %vm164_vm8, 1.0, %v4476_v16  ;;  %v445_v59 = vand.u32 4294901760, %v444_v53  ;;  %v473_v60 = vand.u32 4294901760, %v3847_v49  ;;  %3367 = vmatprep.subr.bf16.mxu0 %v3758_v43 }
  0x8c   :  { %v281_v61 = vsel %vm261_vm0, %v3857_v56, 0  ;;  %v284_v62 = vsel %vm261_vm0, %v3860_v57, 0  ;;  %v483_v63 = vand.u32 4294901760, %v3849_v50  ;;  %v465_v0 = vand.u32 4294901760, %v464_v54 }
  0x8d   :  { %v3869_v1 = vsub.f32 %v281_v61, %v281_v61  ;;  %v3871_v3 = vsub.f32 %v284_v62, %v284_v62  ;;  %2931 = vmatmul.mubr.f32.vlgmr.msra.gmra.mrb[0].mxu1 %v445_v59  ;;  %3126 = vmatmul.mubr.f32.gmra.mrb[2].mxu0 %v463_v46  ;;  %v61_v4 = vpop.permute.xlu0 %60  ;;  %v65_v12 = vpop.permute.xlu1 %64  ;;  %v474_v14 = vsub.f32 %v3847_v49, %v473_v60 }
  0x8e   :  { %3317 = vmatpush3.bf16.msra.mxu1 %v3753_v35  ;;  %2933 = vmatprep.mubr.f32.mxu1 %v455_v32  ;;  %vm165_vm9 = vcmp.eq.s32.totalorder %v3793_v10, %v61_v4  ;;  %vm166_vm10 = vcmp.eq.s32.totalorder %v3793_v10, %v65_v12  ;;  %v484_v19 = vsub.f32 %v3849_v50, %v483_v63 }
  0x8f   :  { %4504 = vst [vmem:[#allocation7_spill] sm:$0xff] %v3869_v1  ;;  %4505 = vst [vmem:[#allocation8_spill] sm:$0xff] %v3871_v3  ;;  %v3879_v23 = vsel %vm165_vm9, 1.0, %v4476_v16  ;;  %v3882_v24 = vsel %vm166_vm10, 1.0, %v4476_v16  ;;  %3128 = vmatprep.mubr.f32.mxu0 %v473_v60  ;;  %v475_v28 = vand.u32 4294901760, %v474_v14  ;;  %v493_v29 = vand.u32 4294901760, %v3869_v1  ;;  %3319 = vmatprep.subr.bf16.mxu1 %v3761_v47 }
  0x90   :  { %v287_v35 = vsel %vm261_vm0, %v3879_v23, 0  ;;  %v290_v30 = vsel %vm261_vm0, %v3882_v24, 0  ;;  %v503_v31 = vand.u32 4294901760, %v3871_v3  ;;  %3369 = vmatpush3.bf16.msra.mxu0 %v3758_v43  ;;  %v485_v44 = vand.u32 4294901760, %v484_v19 }
  0x91   :  { %v3892_v36 = vsub.f32 %v287_v35, %v287_v35  ;;  %v3894_v37 = vsub.f32 %v290_v30, %v290_v30  ;;  %2934 = vmatmul.mubr.f32.gmra.mrb[2].mxu1 %v465_v0  ;;  %3129 = vmatmul.mubr.f32.gmra.mrb[4].mxu0 %v483_v63  ;;  %v69_v38 = vpop.permute.xlu0 %68  ;;  %v73_v41 = vpop.permute.xlu1 %72  ;;  %v494_v42 = vsub.f32 %v3869_v1, %v493_v29 }
  0x92   :  { %2936 = vmatprep.mubr.f32.mxu1 %v475_v28  ;;  %vm167_vm11 = vcmp.eq.s32.totalorder %v3793_v10, %v69_v38  ;;  %vm168_vm12 = vcmp.eq.s32.totalorder %v3793_v10, %v73_v41  ;;  %3131 = vmatprep.mubr.f32.mxu0 %v493_v29  ;;  %v504_v45 = vsub.f32 %v3871_v3, %v503_v31 }
  0x93   :  { %4506 = vst [vmem:[#allocation9_spill] sm:$0xff] %v3892_v36  ;;  %4507 = vst [vmem:[#allocation10_spill] sm:$0xff] %v3894_v37  ;;  %v3901_v43 = vsel %vm167_vm11, 1.0, %v4476_v16  ;;  %v3904_v46 = vsel %vm168_vm12, 1.0, %v4476_v16  ;;  %v495_v48 = vand.u32 4294901760, %v494_v42  ;;  %v513_v51 = vand.u32 4294901760, %v3892_v36  ;;  %3321 = vmatpush3.bf16.msra.mxu1 %v3761_v47  ;;  %3371 = vmatprep.subr.bf16.mxu0 %v3770_v55 }
  0x94   :  { %v293_v52 = vsel %vm261_vm0, %v3901_v43, 0  ;;  %v296_v53 = vsel %vm261_vm0, %v3904_v46, 0  ;;  %v523_v54 = vand.u32 4294901760, %v3894_v37  ;;  %3323 = vmatprep.subr.bf16.mxu1 %v3772_v58  ;;  %3373 = vmatpush3.bf16.msra.mxu0 %v3770_v55  ;;  %v505_v32 = vand.u32 4294901760, %v504_v45 }
  0x95   :  { %v3916_v59 = vsub.f32 %v293_v52, %v293_v52  ;;  %v3918_v60 = vsub.f32 %v296_v53, %v296_v53  ;;  %2937 = vmatmul.mubr.f32.gmra.mrb[4].mxu1 %v485_v44  ;;  %3132 = vmatmul.mubr.f32.gmra.mrb[6].mxu0 %v503_v31  ;;  %v77_v47 = vpop.permute.xlu0 %76  ;;  %v81_v61 = vpop.permute.xlu1 %80  ;;  %v514_v62 = vsub.f32 %v3892_v36, %v513_v51 }
  0x96   :  { %2939 = vmatprep.mubr.f32.mxu1 %v495_v48  ;;  %vm169_vm13 = vcmp.eq.s32.totalorder %v3793_v10, %v77_v47  ;;  %vm170_vm14 = vcmp.eq.s32.totalorder %v3793_v10, %v81_v61  ;;  %3134 = vmatprep.mubr.f32.mxu0 %v513_v51  ;;  %v524_v63 = vsub.f32 %v3894_v37, %v523_v54 }
  0x97   :  { %4508 = vst [vmem:[#allocation11_spill] sm:$0xff] %v3916_v59  ;;  %4509 = vst [vmem:[#allocation12_spill] sm:$0xff] %v3918_v60  ;;  %v3925_v55 = vsel %vm169_vm13, 1.0, %v4476_v16  ;;  %v3928_v4 = vsel %vm170_vm14, 1.0, %v4476_v16  ;;  %v515_v12 = vand.u32 4294901760, %v514_v62  ;;  %v533_v14 = vand.u32 4294901760, %v3916_v59  ;;  %3325 = vmatpush3.bf16.msra.mxu1 %v3772_v58  ;;  %3375 = vmatprep.subr.bf16.mxu0 %v3780_v2 }
  0x98   :  { %v299_v0 = vsel %vm261_vm0, %v3925_v55, 0  ;;  %v302_v19 = vsel %vm261_vm0, %v3928_v4, 0  ;;  %v543_v28 = vand.u32 4294901760, %v3918_v60  ;;  %3327 = vmatprep.subr.bf16.mxu1 %v3782_v5  ;;  %3377 = vmatpush3.bf16.msra.mxu0 %v3780_v2  ;;  %v525_v38 = vand.u32 4294901760, %v524_v63 }
  0x99   :  { %v3940_v29 = vsub.f32 %v299_v0, %v299_v0  ;;  %v3942_v35 = vsub.f32 %v302_v19, %v302_v19  ;;  %2940 = vmatmul.mubr.f32.gmra.mrb[6].mxu1 %v505_v32  ;;  %3135 = vmatmul.mubr.f32.gmra.mrb[8].mxu0 %v523_v54  ;;  %v85_v58 = vpop.permute.xlu0 %84  ;;  %v89_v30 = vpop.permute.xlu1 %88  ;;  %v534_v31 = vsub.f32 %v3916_v59, %v533_v14 }
  0x9a   :  { %2942 = vmatprep.mubr.f32.mxu1 %v515_v12  ;;  %vm171_vm15 = vcmp.eq.s32.totalorder %v3793_v10, %v85_v58  ;;  %vm172_vm1 = vcmp.eq.s32.totalorder %v3793_v10, %v89_v30  ;;  %3137 = vmatprep.mubr.f32.mxu0 %v533_v14  ;;  %v544_v41 = vsub.f32 %v3918_v60, %v543_v28 }
  0x9b   :  { %4510 = vst [vmem:[#allocation13_spill] sm:$0xff] %v3940_v29  ;;  %4511 = vst [vmem:[#allocation14_spill] sm:$0xff] %v3942_v35  ;;  %v3949_v2 = vsel %vm171_vm15, 1.0, %v4476_v16  ;;  %v3952_v42 = vsel %vm172_vm1, 1.0, %v4476_v16  ;;  %v535_v44 = vand.u32 4294901760, %v534_v31  ;;  %v553_v45 = vand.u32 4294901760, %v3940_v29  ;;  %3329 = vmatpush3.bf16.msra.mxu1 %v3782_v5  ;;  %3379 = vmatprep.subr.bf16.mxu0 %v3691_v13 }
  0x9c   :  { %v305_v48 = vsel %vm261_vm0, %v3949_v2, 0  ;;  %v308_v51 = vsel %vm261_vm0, %v3952_v42, 0  ;;  %v563_v52 = vand.u32 4294901760, %v3942_v35  ;;  %3331 = vmatprep.subr.bf16.mxu1 %v3786_v6  ;;  %v545_v62 = vand.u32 4294901760, %v544_v41 }
  0x9d   :  { %v3963_v53 = vsub.f32 %v305_v48, %v305_v48  ;;  %v3965_v54 = vsub.f32 %v308_v51, %v308_v51  ;;  %2943 = vmatmul.mubr.f32.gmra.mrb[8].mxu1 %v525_v38  ;;  %3138 = vmatmul.mubr.f32.gmra.mrb[10].mxu0 %v543_v28  ;;  %v96_v47 = vpop.permute.xlu0 %95  ;;  %v100_v5 = vpop.permute.xlu1 %99  ;;  %v554_v61 = vsub.f32 %v3940_v29, %v553_v45 }
  0x9e   :  { %2945 = vmatprep.mubr.f32.mxu1 %v535_v44  ;;  %vm173_vm2 = vcmp.eq.s32.totalorder %v3793_v10, %v96_v47  ;;  %vm174_vm3 = vcmp.eq.s32.totalorder %v3793_v10, %v100_v5  ;;  %3140 = vmatprep.mubr.f32.mxu0 %v553_v45  ;;  %v564_v32 = vsub.f32 %v3942_v35, %v563_v52 }
  0x9f   :  { %4512 = vst [vmem:[#allocation15_spill] sm:$0xff] %v3963_v53  ;;  %4513 = vst [vmem:[#allocation16_spill] sm:$0xff] %v3965_v54  ;;  %v3972_v63 = vsel %vm173_vm2, 1.0, %v4476_v16  ;;  %v3975_v12 = vsel %vm174_vm3, 1.0, %v4476_v16  ;;  %v555_v14 = vand.u32 4294901760, %v554_v61  ;;  %v573_v0 = vand.u32 4294901760, %v3963_v53 }
  0xa0   :  { %v311_v19 = vsel %vm261_vm0, %v3972_v63, 0  ;;  %v314_v28 = vsel %vm261_vm0, %v3975_v12, 0  ;;  %v583_v58 = vand.u32 4294901760, %v3965_v54  ;;  %v565_v45 = vand.u32 4294901760, %v564_v32 }
  0xa1   :  { %v3983_v30 = vsub.f32 %v311_v19, %v311_v19  ;;  %v3985_v31 = vsub.f32 %v314_v28, %v314_v28  ;;  %2946 = vmatmul.mubr.f32.gmra.mrb[10].mxu1 %v545_v62  ;;  %3141 = vmatmul.mubr.f32.gmra.mrb[12].mxu0 %v563_v52  ;;  %v104_v38 = vpop.permute.xlu0 %103  ;;  %v108_v41 = vpop.permute.xlu1 %107  ;;  %v574_v44 = vsub.f32 %v3963_v53, %v573_v0  ;;  %vm2414_vm3 = vcmask 130112  }
  0xa2   :  { %2948 = vmatprep.mubr.f32.mxu1 %v555_v14  ;;  %vm175_vm4 = vcmp.eq.s32.totalorder %v3793_v10, %v104_v38  ;;  %vm176_vm5 = vcmp.eq.s32.totalorder %v3793_v10, %v108_v41  ;;  %3143 = vmatprep.mubr.f32.mxu0 %v573_v0  ;;  %v584_v48 = vsub.f32 %v3965_v54, %v583_v58  ;;  %v4520_v54 = vmov 0.0  }
  0xa3   :  { %4514 = vst [vmem:[#allocation17_spill] sm:$0xff] %v3983_v30  ;;  %4515 = vst [vmem:[#allocation18_spill] sm:$0xff] %v3985_v31  ;;  %v3992_v51 = vsel %vm175_vm4, 1.0, %v4476_v16  ;;  %v3995_v47 = vsel %vm176_vm5, 1.0, %v4476_v16  ;;  %v575_v52 = vand.u32 4294901760, %v574_v44  ;;  %v593_v5 = vand.u32 4294901760, %v3983_v30 }
  0xa4   :  { %v317_v61 = vsel %vm261_vm0, %v3992_v51, 0  ;;  %v320_v62 = vsel %vm261_vm0, %v3995_v47, 0  ;;  %v603_v14 = vand.u32 4294901760, %v3985_v31  ;;  %v585_v41 = vand.u32 4294901760, %v584_v48 }
  0xa5   :  { %v4003_v32 = vsub.f32 %v317_v61, %v317_v61  ;;  %v4005_v0 = vsub.f32 %v320_v62, %v320_v62  ;;  %2949 = vmatmul.mubr.f32.gmra.mrb[12].mxu1 %v565_v45  ;;  %3144 = vmatmul.mubr.f32.gmra.mrb[14].mxu0 %v583_v58  ;;  %v112_v19 = vpop.permute.xlu0 %111  ;;  %v116_v28 = vpop.permute.xlu1 %115  ;;  %v594_v38 = vsub.f32 %v3983_v30, %v593_v5  ;;  %vm2421_vm4 = vcmask 195712  }
  0xa6   :  { %2951 = vmatprep.mubr.f32.mxu1 %v575_v52  ;;  %vm177_vm6 = vcmp.eq.s32.totalorder %v3793_v10, %v112_v19  ;;  %vm178_vm7 = vcmp.eq.s32.totalorder %v3793_v10, %v116_v28  ;;  %3146 = vmatprep.mubr.f32.mxu0 %v593_v5  ;;  %v604_v44 = vsub.f32 %v3985_v31, %v603_v14  ;;  %vm2428_vm5 = vcmask 261312  }
  0xa7   :  { %4516 = vst [vmem:[#allocation19_spill] sm:$0xff] %v4003_v32  ;;  %4517 = vst [vmem:[#allocation20_spill] sm:$0xff] %v4005_v0  ;;  %v4012_v61 = vsel %vm177_vm6, 1.0, %v4476_v16  ;;  %v4015_v62 = vsel %vm178_vm7, 1.0, %v4476_v16  ;;  %v595_v58 = vand.u32 4294901760, %v594_v38  ;;  %v613_v45 = vand.u32 4294901760, %v4003_v32 }
  0xa8   :  { %v323_v52 = vsel %vm261_vm0, %v4012_v61, 0  ;;  %v326_v19 = vsel %vm261_vm0, %v4015_v62, 0  ;;  %v623_v5 = vand.u32 4294901760, %v4005_v0  ;;  %v605_v31 = vand.u32 4294901760, %v604_v44 }
  0xa9   :  { %v4023_v48 = vsub.f32 %v323_v52, %v323_v52  ;;  %v4025_v28 = vsub.f32 %v326_v19, %v326_v19  ;;  %2952 = vmatmul.mubr.f32.gmra.mrb[14].mxu1 %v585_v41  ;;  %3147 = vmatmul.mubr.f32.gmra.mrb[16].mxu0 %v603_v14  ;;  %v120_v8 = vpop.permute.xlu0 %119  ;;  %v124_v16 = vpop.permute.xlu1 %123  ;;  %v614_v38 = vsub.f32 %v4003_v32, %v613_v45  ;;  %vm2435_vm6 = vcmask 326912  }
  0xaa   :  { %2954 = vmatprep.mubr.f32.mxu1 %v595_v58  ;;  %vm179_vm8 = vcmp.eq.s32.totalorder %v3793_v10, %v120_v8  ;;  %vm180_vm9 = vcmp.eq.s32.totalorder %v3793_v10, %v124_v16  ;;  %3149 = vmatprep.mubr.f32.mxu0 %v613_v45  ;;  %v624_v30 = vsub.f32 %v4005_v0, %v623_v5  ;;  %vm2442_vm7 = vcmask 392512  }
  0xab   :  { %4518 = vst [vmem:[#allocation21_spill] sm:$0xff] %v4023_v48  ;;  %4519 = vst [vmem:[#allocation22_spill] sm:$0xff] %v4025_v28  ;;  %v4032_v52 = vsel %vm179_vm8, 1.0, %v4520_v54  ;;  %v4035_v19 = vsel %vm180_vm9, 1.0, %v4520_v54  ;;  %v615_v14 = vand.u32 4294901760, %v614_v38  ;;  %v633_v41 = vand.u32 4294901760, %v4023_v48 }
  0xac   :  { %v329_v58 = vsel %vm261_vm0, %v4032_v52, 0  ;;  %v332_v8 = vsel %vm261_vm0, %v4035_v19, 0  ;;  %v643_v16 = vand.u32 4294901760, %v4025_v28  ;;  %v625_v53 = vand.u32 4294901760, %v624_v30 }
  0xad   :  { %v4043_v44 = vsub.f32 %v329_v58, %v329_v58  ;;  %v4045_v45 = vsub.f32 %v332_v8, %v332_v8  ;;  %2955 = vmatmul.mubr.f32.gmra.mrb[16].mxu1 %v605_v31  ;;  %3150 = vmatmul.mubr.f32.gmra.mrb[18].mxu0 %v623_v5  ;;  %v128_v0 = vpop.permute.xlu0 %127  ;;  %v132_v32 = vpop.permute.xlu1 %131  ;;  %v634_v38 = vsub.f32 %v4023_v48, %v633_v41  ;;  %vm2449_vm8 = vcmask 458112  }
  0xae   :  { %2957 = vmatprep.mubr.f32.mxu1 %v615_v14  ;;  %vm181_vm10 = vcmp.eq.s32.totalorder %v3793_v10, %v128_v0  ;;  %vm182_vm11 = vcmp.eq.s32.totalorder %v3793_v10, %v132_v32  ;;  %3152 = vmatprep.mubr.f32.mxu0 %v633_v41  ;;  %v644_v35 = vsub.f32 %v4025_v28, %v643_v16  ;;  %vm2456_vm9 = vcmask 523712  }
  0xaf   :  { %4521 = vst [vmem:[#allocation23_spill] sm:$0xff] %v4043_v44  ;;  %4522 = vst [vmem:[#allocation24_spill] sm:$0xff] %v4045_v45  ;;  %v4052_v58 = vsel %vm181_vm10, 1.0, %v4520_v54  ;;  %v4055_v8 = vsel %vm182_vm11, 1.0, %v4520_v54  ;;  %v635_v31 = vand.u32 4294901760, %v634_v38  ;;  %v653_v5 = vand.u32 4294901760, %v4043_v44 }
  0xb0   :  { %v335_v14 = vsel %vm261_vm0, %v4052_v58, 0  ;;  %v338_v0 = vsel %vm261_vm0, %v4055_v8, 0  ;;  %v663_v32 = vand.u32 4294901760, %v4045_v45  ;;  %v645_v29 = vand.u32 4294901760, %v644_v35 }
  0xb1   :  { %v4063_v30 = vsub.f32 %v335_v14, %v335_v14  ;;  %v4065_v41 = vsub.f32 %v338_v0, %v338_v0  ;;  %2958 = vmatmul.mubr.f32.gmra.mrb[18].mxu1 %v625_v53  ;;  %3153 = vmatmul.mubr.f32.gmra.mrb[20].mxu0 %v643_v16  ;;  %v136_v28 = vpop.permute.xlu0 %135  ;;  %v140_v48 = vpop.permute.xlu1 %139  ;;  %v654_v38 = vsub.f32 %v4043_v44, %v653_v5  ;;  %vm2463_vm10 = vcmask 589312  }
  0xb2   :  { %2960 = vmatprep.mubr.f32.mxu1 %v635_v31  ;;  %vm183_vm12 = vcmp.eq.s32.totalorder %v3793_v10, %v136_v28  ;;  %vm184_vm13 = vcmp.eq.s32.totalorder %v3793_v10, %v140_v48  ;;  %3155 = vmatprep.mubr.f32.mxu0 %v653_v5  ;;  %v664_v60 = vsub.f32 %v4045_v45, %v663_v32  ;;  %vm2470_vm11 = vcmask 654912  }
  0xb3   :  { %4523 = vst [vmem:[#allocation25_spill] sm:$0xff] %v4063_v30  ;;  %4524 = vst [vmem:[#allocation26_spill] sm:$0xff] %v4065_v41  ;;  %v4072_v14 = vsel %vm183_vm12, 1.0, %v4520_v54  ;;  %v4075_v0 = vsel %vm184_vm13, 1.0, %v4520_v54  ;;  %v655_v53 = vand.u32 4294901760, %v654_v38  ;;  %v673_v16 = vand.u32 4294901760, %v4063_v30 }
  0xb4   :  { %v341_v31 = vsel %vm261_vm0, %v4072_v14, 0  ;;  %v344_v28 = vsel %vm261_vm0, %v4075_v0, 0  ;;  %v683_v48 = vand.u32 4294901760, %v4065_v41  ;;  %v665_v59 = vand.u32 4294901760, %v664_v60 }
  0xb5   :  { %v4083_v35 = vsub.f32 %v341_v31, %v341_v31  ;;  %v4085_v5 = vsub.f32 %v344_v28, %v344_v28  ;;  %2961 = vmatmul.mubr.f32.gmra.mrb[20].mxu1 %v645_v29  ;;  %3156 = vmatmul.mubr.f32.gmra.mrb[22].mxu0 %v663_v32  ;;  %v144_v45 = vpop.permute.xlu0 %143  ;;  %v148_v44 = vpop.permute.xlu1 %147  ;;  %v674_v38 = vsub.f32 %v4063_v30, %v673_v16  ;;  %vm2477_vm12 = vcmask 720512  }
  0xb6   :  { %2963 = vmatprep.mubr.f32.mxu1 %v655_v53  ;;  %vm185_vm14 = vcmp.eq.s32.totalorder %v3793_v10, %v144_v45  ;;  %vm186_vm15 = vcmp.eq.s32.totalorder %v3793_v10, %v148_v44  ;;  %3158 = vmatprep.mubr.f32.mxu0 %v673_v16  ;;  %v684_v37 = vsub.f32 %v4065_v41, %v683_v48  ;;  %vm2484_vm13 = vcmask 786112  }
  0xb7   :  { %4525 = vst [vmem:[#allocation27_spill] sm:$0xff] %v4083_v35  ;;  %4526 = vst [vmem:[#allocation28_spill] sm:$0xff] %v4085_v5  ;;  %v4092_v31 = vsel %vm185_vm14, 1.0, %v4520_v54  ;;  %v4095_v28 = vsel %vm186_vm15, 1.0, %v4520_v54  ;;  %v675_v29 = vand.u32 4294901760, %v674_v38  ;;  %v693_v32 = vand.u32 4294901760, %v4083_v35 }
  0xb8   :  { %v347_v53 = vsel %vm261_vm0, %v4092_v31, 0  ;;  %v350_v45 = vsel %vm261_vm0, %v4095_v28, 0  ;;  %v703_v44 = vand.u32 4294901760, %v4085_v5  ;;  %v685_v36 = vand.u32 4294901760, %v684_v37 }
  0xb9   :  { %v4103_v60 = vsub.f32 %v347_v53, %v347_v53  ;;  %v4105_v16 = vsub.f32 %v350_v45, %v350_v45  ;;  %2964 = vmatmul.mubr.f32.gmra.mrb[22].mxu1 %v665_v59  ;;  %3159 = vmatmul.mubr.f32.gmra.mrb[24].mxu0 %v683_v48  ;;  %v152_v41 = vpop.permute.xlu0 %151  ;;  %v156_v30 = vpop.permute.xlu1 %155  ;;  %v694_v38 = vsub.f32 %v4083_v35, %v693_v32  ;;  %vm2491_vm14 = vcmask 851712  }
  0xba   :  { %2966 = vmatprep.mubr.f32.mxu1 %v675_v29  ;;  %vm187_vm1 = vcmp.eq.s32.totalorder %v3793_v10, %v152_v41  ;;  %vm188_vm2 = vcmp.eq.s32.totalorder %v3793_v10, %v156_v30  ;;  %3161 = vmatprep.mubr.f32.mxu0 %v693_v32  ;;  %v704_v3 = vsub.f32 %v4085_v5, %v703_v44  ;;  %vm2498_vm15 = vcmask 917312  }
  0xbb   :  { %v4112_v53 = vsel %vm187_vm1, 1.0, %v4520_v54  ;;  %v4115_v45 = vsel %vm188_vm2, 1.0, %v4520_v54  ;;  %v695_v59 = vand.u32 4294901760, %v694_v38  ;;  %v713_v48 = vand.u32 4294901760, %v4103_v60 }
  0xbc   :  { %v353_v29 = vsel %vm261_vm0, %v4112_v53, 0  ;;  %v356_v41 = vsel %vm261_vm0, %v4115_v45, 0  ;;  %v723_v30 = vand.u32 4294901760, %v4105_v16  ;;  %v705_v38 = vand.u32 4294901760, %v704_v3 }
  0xbd   :  { %v4123_v37 = vsub.f32 %v353_v29, %v353_v29  ;;  %v4125_v32 = vsub.f32 %v356_v41, %v356_v41  ;;  %2967 = vmatmul.mubr.f32.gmra.mrb[24].mxu1 %v685_v36  ;;  %3162 = vmatmul.mubr.f32.gmra.mrb[26].mxu0 %v703_v44  ;;  %v714_v54 = vsub.f32 %v4103_v60, %v713_v48  ;;  %vm2505_vm1 = vcmask 982912  }
  0xbe   :  { %2969 = vmatprep.mubr.f32.mxu1 %v695_v59  ;;  %3164 = vmatprep.mubr.f32.mxu0 %v713_v48  ;;  %v724_v35 = vsub.f32 %v4105_v16, %v723_v30  ;;  %vm2512_vm2 = vcmask 1048512  }
  0xbf   :  { %v715_v10 = vand.u32 4294901760, %v714_v54  ;;  %v733_v5 = vand.u32 4294901760, %v4123_v37  ;;  %v743_v1 = vand.u32 4294901760, %v4125_v32 }
  0xc0   :  { %v725_v36 = vand.u32 4294901760, %v724_v35 }
  0xc1   :  { %2970 = vmatmul.mubr.f32.gmra.mrb[26].mxu1 %v705_v38  ;;  %3165 = vmatmul.mubr.f32.gmra.mrb[28].mxu0 %v723_v30  ;;  %v734_v29 = vsub.f32 %v4123_v37, %v733_v5  ;;  %v744_v41 = vsub.f32 %v4125_v32, %v743_v1 }
  0xc2   :  { %2972 = vmatprep.mubr.f32.mxu1 %v715_v10  ;;  %3167 = vmatprep.mubr.f32.mxu0 %v733_v5  ;;  %v4534_v10 = vld [vmem:[#allocation14_spill] sm:$0xff] }
  0xc3   :  { %v735_v44 = vand.u32 4294901760, %v734_v29  ;;  %v745_v3 = vand.u32 4294901760, %v744_v41 }
  0xc5   :  { %2973 = vmatmul.mubr.f32.gmra.mrb[28].mxu1 %v725_v36  ;;  %3168 = vmatmul.mubr.f32.gmra.mrb[30].mxu0 %v743_v1 }
  0xc6   :  { %2975 = vmatprep.mubr.f32.mxu1 %v735_v44  ;;  %3186 = vmatprep.mubr.msk.f32.mxu0 %vm261_vm0, %v3800_v17 }
  0xc9   :  { %2976 = vmatmul.mubr.f32.gmra.mrb[30].mxu1 %v745_v3  ;;  %3187 = vmatmul.mubr.msk.f32.vlgmr.msra.gmra.mrb[0].mxu0 %vm261_vm0, %v3816_v26 }
  0xca   :  { %2994 = vmatprep.mubr.msk.f32.mxu1 %vm261_vm0, %v3800_v17  ;;  %3189 = vmatprep.mubr.msk.f32.mxu0 %vm261_vm0, %v3803_v18 }
  0xcb   :  { %3381 = vmatpush3.bf16.msra.mxu0 %v3691_v13  ;;  %v4527_v13 = vld [vmem:[#allocation7_spill] sm:$0xff] }
  0xcc   :  { %3383 = vmatprep.subr.bf16.mxu0 %v3696_v15 }
  0xcd   :  { %2995 = vmatmul.mubr.msk.f32.vlgmr.msra.gmra.mrb[0].mxu1 %vm261_vm0, %v3816_v26  ;;  %3190 = vmatmul.mubr.msk.f32.gmra.mrb[2].mxu0 %vm261_vm0, %v3819_v27 }
  0xce   :  { %3333 = vmatpush3.bf16.msra.mxu1 %v3786_v6  ;;  %2997 = vmatprep.mubr.msk.f32.mxu1 %vm261_vm0, %v3803_v18  ;;  %v4531_v6 = vld [vmem:[#allocation11_spill] sm:$0xff] }
  0xcf   :  { %3192 = vmatprep.mubr.msk.f32.mxu0 %vm261_vm0, %v3835_v39  ;;  %3335 = vmatprep.subr.bf16.mxu1 %v3788_v7 }
  0xd0   :  { %3385 = vmatpush3.bf16.msra.mxu0 %v3696_v15  ;;  %v4528_v15 = vld [vmem:[#allocation8_spill] sm:$0xff] }
  0xd1   :  { %2998 = vmatmul.mubr.msk.f32.gmra.mrb[2].mxu1 %vm261_vm0, %v3819_v27  ;;  %3193 = vmatmul.mubr.msk.f32.gmra.mrb[4].mxu0 %vm261_vm0, %v3838_v40 }
  0xd2   :  { %3000 = vmatprep.mubr.msk.f32.mxu1 %vm261_vm0, %v3835_v39  ;;  %3195 = vmatprep.mubr.msk.f32.mxu0 %vm261_vm0, %v3857_v56 }
  0xd3   :  { %3337 = vmatpush3.bf16.msra.mxu1 %v3788_v7  ;;  %3387 = vmatprep.subr.bf16.mxu0 %v3723_v22  ;;  %v4532_v7 = vld [vmem:[#allocation12_spill] sm:$0xff] }
  0xd4   :  { %3339 = vmatprep.subr.bf16.mxu1 %v3790_v9  ;;  %3389 = vmatpush3.bf16.msra.mxu0 %v3723_v22  ;;  %v4529_v22 = vld [vmem:[#allocation9_spill] sm:$0xff] }
  0xd5   :  { %3001 = vmatmul.mubr.msk.f32.gmra.mrb[4].mxu1 %vm261_vm0, %v3838_v40  ;;  %3196 = vmatmul.mubr.msk.f32.gmra.mrb[6].mxu0 %vm261_vm0, %v3860_v57 }
  0xd6   :  { %3003 = vmatprep.mubr.msk.f32.mxu1 %vm261_vm0, %v3857_v56  ;;  %3198 = vmatprep.mubr.msk.f32.mxu0 %vm261_vm0, %v3879_v23 }
  0xd7   :  { %3341 = vmatpush3.bf16.msra.mxu1 %v3790_v9  ;;  %3391 = vmatprep.subr.bf16.mxu0 %v3735_v25  ;;  %v4533_v9 = vld [vmem:[#allocation13_spill] sm:$0xff] }
  0xd8   :  { %3343 = vmatprep.subr.bf16.mxu1 %v3795_v11  ;;  %3393 = vmatpush3.bf16.msra.mxu0 %v3735_v25  ;;  %v4530_v25 = vld [vmem:[#allocation10_spill] sm:$0xff] }
  0xd9   :  { %3004 = vmatmul.mubr.msk.f32.gmra.mrb[6].mxu1 %vm261_vm0, %v3860_v57  ;;  %3199 = vmatmul.mubr.msk.f32.gmra.mrb[8].mxu0 %vm261_vm0, %v3882_v24 }
  0xda   :  { %3006 = vmatprep.mubr.msk.f32.mxu1 %vm261_vm0, %v3879_v23  ;;  %3201 = vmatprep.mubr.msk.f32.mxu0 %vm261_vm0, %v3901_v43 }
  0xdb   :  { %3345 = vmatpush3.bf16.msra.mxu1 %v3795_v11  ;;  %v4535_v11 = vld [vmem:[#allocation15_spill] sm:$0xff] }
  0xdd   :  { %3007 = vmatmul.mubr.msk.f32.gmra.mrb[8].mxu1 %vm261_vm0, %v3882_v24  ;;  %3202 = vmatmul.mubr.msk.f32.gmra.mrb[10].mxu0 %vm261_vm0, %v3904_v46 }
  0xde   :  { %3009 = vmatprep.mubr.msk.f32.mxu1 %vm261_vm0, %v3901_v43  ;;  %3204 = vmatprep.mubr.msk.f32.mxu0 %vm261_vm0, %v3925_v55 }
  0xe1   :  { %3010 = vmatmul.mubr.msk.f32.gmra.mrb[10].mxu1 %vm261_vm0, %v3904_v46  ;;  %3205 = vmatmul.mubr.msk.f32.gmra.mrb[12].mxu0 %vm261_vm0, %v3928_v4 }
  0xe2   :  { %3012 = vmatprep.mubr.msk.f32.mxu1 %vm261_vm0, %v3925_v55  ;;  %3207 = vmatprep.mubr.msk.f32.mxu0 %vm261_vm0, %v3949_v2 }
  0xe5   :  { %3013 = vmatmul.mubr.msk.f32.gmra.mrb[12].mxu1 %vm261_vm0, %v3928_v4  ;;  %3208 = vmatmul.mubr.msk.f32.gmra.mrb[14].mxu0 %vm261_vm0, %v3952_v42 }
  0xe6   :  { %3015 = vmatprep.mubr.msk.f32.mxu1 %vm261_vm0, %v3949_v2  ;;  %3210 = vmatprep.mubr.msk.f32.mxu0 %vm261_vm0, %v3972_v63 }
  0xe9   :  { %3016 = vmatmul.mubr.msk.f32.gmra.mrb[14].mxu1 %vm261_vm0, %v3952_v42  ;;  %3211 = vmatmul.mubr.msk.f32.gmra.mrb[16].mxu0 %vm261_vm0, %v3975_v12 }
  0xea   :  { %3018 = vmatprep.mubr.msk.f32.mxu1 %vm261_vm0, %v3972_v63  ;;  %3213 = vmatprep.mubr.msk.f32.mxu0 %vm261_vm0, %v3992_v51 }
  0xed   :  { %3019 = vmatmul.mubr.msk.f32.gmra.mrb[16].mxu1 %vm261_vm0, %v3975_v12  ;;  %3214 = vmatmul.mubr.msk.f32.gmra.mrb[18].mxu0 %vm261_vm0, %v3995_v47 }
  0xee   :  { %3021 = vmatprep.mubr.msk.f32.mxu1 %vm261_vm0, %v3992_v51  ;;  %3216 = vmatprep.mubr.msk.f32.mxu0 %vm261_vm0, %v4012_v61 }
  0xf1   :  { %3022 = vmatmul.mubr.msk.f32.gmra.mrb[18].mxu1 %vm261_vm0, %v3995_v47  ;;  %3217 = vmatmul.mubr.msk.f32.gmra.mrb[20].mxu0 %vm261_vm0, %v4015_v62 }
  0xf2   :  { %3024 = vmatprep.mubr.msk.f32.mxu1 %vm261_vm0, %v4012_v61  ;;  %3219 = vmatprep.mubr.msk.f32.mxu0 %vm261_vm0, %v4032_v52 }
  0xf5   :  { %3025 = vmatmul.mubr.msk.f32.gmra.mrb[20].mxu1 %vm261_vm0, %v4015_v62  ;;  %3220 = vmatmul.mubr.msk.f32.gmra.mrb[22].mxu0 %vm261_vm0, %v4035_v19 }
  0xf6   :  { %3027 = vmatprep.mubr.msk.f32.mxu1 %vm261_vm0, %v4032_v52  ;;  %3222 = vmatprep.mubr.msk.f32.mxu0 %vm261_vm0, %v4052_v58 }
  0xf9   :  { %3028 = vmatmul.mubr.msk.f32.gmra.mrb[22].mxu1 %vm261_vm0, %v4035_v19  ;;  %3223 = vmatmul.mubr.msk.f32.gmra.mrb[24].mxu0 %vm261_vm0, %v4055_v8 }
  0xfa   :  { %3030 = vmatprep.mubr.msk.f32.mxu1 %vm261_vm0, %v4052_v58  ;;  %3225 = vmatprep.mubr.msk.f32.mxu0 %vm261_vm0, %v4072_v14 }
  0xfd   :  { %3031 = vmatmul.mubr.msk.f32.gmra.mrb[24].mxu1 %vm261_vm0, %v4055_v8  ;;  %3226 = vmatmul.mubr.msk.f32.gmra.mrb[26].mxu0 %vm261_vm0, %v4075_v0 }
  0xfe   :  { %3033 = vmatprep.mubr.msk.f32.mxu1 %vm261_vm0, %v4072_v14  ;;  %3228 = vmatprep.mubr.msk.f32.mxu0 %vm261_vm0, %v4092_v31 }
 0x101   :  { %3034 = vmatmul.mubr.msk.f32.gmra.mrb[26].mxu1 %vm261_vm0, %v4075_v0  ;;  %3229 = vmatmul.mubr.msk.f32.gmra.mrb[28].mxu0 %vm261_vm0, %v4095_v28 }
 0x102   :  { %3036 = vmatprep.mubr.msk.f32.mxu1 %vm261_vm0, %v4092_v31  ;;  %3231 = vmatprep.mubr.msk.f32.mxu0 %vm261_vm0, %v4112_v53 }
 0x105   :  { %3037 = vmatmul.mubr.msk.f32.gmra.mrb[28].mxu1 %vm261_vm0, %v4095_v28  ;;  %3232 = vmatmul.mubr.msk.f32.gmra.mrb[30].mxu0 %vm261_vm0, %v4115_v45 }
 0x106   :  { %3039 = vmatprep.mubr.msk.f32.mxu1 %vm261_vm0, %v4112_v53  ;;  %3250 = vmatprep.mubr.msk.f32.mxu0 %vm261_vm0, %v3800_v17  ;;  %v4536_v17 = vld [vmem:[#allocation16_spill] sm:$0xff] }
 0x109   :  { %3040 = vmatmul.mubr.msk.f32.gmra.mrb[30].mxu1 %vm261_vm0, %v4115_v45  ;;  %3251 = vmatmul.mubr.msk.f32.vlgmr.msra.gmra.mrb[0].mxu0 %vm261_vm0, %v3816_v26  ;;  %v4540_v26 = vld [vmem:[#allocation20_spill] sm:$0xff] }
 0x10a   :  { %3058 = vmatprep.mubr.f32.mxu1 %v3809_v20  ;;  %3253 = vmatprep.mubr.msk.f32.mxu0 %vm261_vm0, %v3803_v18  ;;  %v4537_v18 = vld [vmem:[#allocation17_spill] sm:$0xff]  ;;  %v4538_v20 = vld [vmem:[#allocation18_spill] sm:$0xff] }
 0x10d   :  { %3059 = vmatmul.mubr.f32.vlgmr.msra.gmra.mrb[0].mxu1 %v3827_v33  ;;  %3254 = vmatmul.mubr.msk.f32.gmra.mrb[2].mxu0 %vm261_vm0, %v3819_v27  ;;  %v4541_v27 = vld [vmem:[#allocation21_spill] sm:$0xff]  ;;  %v4542_v33 = vld [vmem:[#allocation22_spill] sm:$0xff] }
 0x10e   :  { %3061 = vmatprep.mubr.f32.mxu1 %v3811_v21  ;;  %3256 = vmatprep.mubr.msk.f32.mxu0 %vm261_vm0, %v3835_v39  ;;  %v4539_v21 = vld [vmem:[#allocation19_spill] sm:$0xff]  ;;  %v4544_v39 = vld [vmem:[#allocation24_spill] sm:$0xff] }
 0x111   :  { %3062 = vmatmul.mubr.f32.gmra.mrb[2].mxu1 %v3829_v34  ;;  %3257 = vmatmul.mubr.msk.f32.gmra.mrb[4].mxu0 %vm261_vm0, %v3838_v40  ;;  %v4543_v34 = vld [vmem:[#allocation23_spill] sm:$0xff]  ;;  %v4545_v40 = vld [vmem:[#allocation25_spill] sm:$0xff] }
 0x112   :  { %3064 = vmatprep.mubr.f32.mxu1 %v3847_v49  ;;  %3259 = vmatprep.mubr.msk.f32.mxu0 %vm261_vm0, %v3857_v56  ;;  %v4546_v49 = vld [vmem:[#allocation26_spill] sm:$0xff]  ;;  %v4548_v56 = vld [vmem:[#allocation28_spill] sm:$0xff] }
 0x115   :  { %3065 = vmatmul.mubr.f32.gmra.mrb[4].mxu1 %v3849_v50  ;;  %3260 = vmatmul.mubr.msk.f32.gmra.mrb[6].mxu0 %vm261_vm0, %v3860_v57  ;;  %v4547_v50 = vld [vmem:[#allocation27_spill] sm:$0xff] }
 0x116   :  { %3067 = vmatprep.mubr.f32.mxu1 %v4527_v13  ;;  %3262 = vmatprep.mubr.msk.f32.mxu0 %vm261_vm0, %v3879_v23 }
 0x119   :  { %3068 = vmatmul.mubr.f32.gmra.mrb[6].mxu1 %v4528_v15  ;;  %3263 = vmatmul.mubr.msk.f32.gmra.mrb[8].mxu0 %vm261_vm0, %v3882_v24 }
 0x11a   :  { %3070 = vmatprep.mubr.f32.mxu1 %v4529_v22  ;;  %3265 = vmatprep.mubr.msk.f32.mxu0 %vm261_vm0, %v3901_v43 }
 0x11d   :  { %3071 = vmatmul.mubr.f32.gmra.mrb[8].mxu1 %v4530_v25  ;;  %3266 = vmatmul.mubr.msk.f32.gmra.mrb[10].mxu0 %vm261_vm0, %v3904_v46 }
 0x11e   :  { %3073 = vmatprep.mubr.f32.mxu1 %v4531_v6  ;;  %3268 = vmatprep.mubr.msk.f32.mxu0 %vm261_vm0, %v3925_v55 }
 0x121   :  { %3074 = vmatmul.mubr.f32.gmra.mrb[10].mxu1 %v4532_v7  ;;  %3269 = vmatmul.mubr.msk.f32.gmra.mrb[12].mxu0 %vm261_vm0, %v3928_v4 }
 0x122   :  { %3076 = vmatprep.mubr.f32.mxu1 %v4533_v9  ;;  %3271 = vmatprep.mubr.msk.f32.mxu0 %vm261_vm0, %v3949_v2 }
 0x125   :  { %3077 = vmatmul.mubr.f32.gmra.mrb[12].mxu1 %v4534_v10  ;;  %3272 = vmatmul.mubr.msk.f32.gmra.mrb[14].mxu0 %vm261_vm0, %v3952_v42 }
 0x126   :  { %3079 = vmatprep.mubr.f32.mxu1 %v4535_v11  ;;  %3274 = vmatprep.mubr.msk.f32.mxu0 %vm261_vm0, %v3972_v63 }
 0x129   :  { %3080 = vmatmul.mubr.f32.gmra.mrb[14].mxu1 %v4536_v17  ;;  %3275 = vmatmul.mubr.msk.f32.gmra.mrb[16].mxu0 %vm261_vm0, %v3975_v12 }
 0x12a   :  { %3082 = vmatprep.mubr.f32.mxu1 %v4537_v18  ;;  %3277 = vmatprep.mubr.msk.f32.mxu0 %vm261_vm0, %v3992_v51 }
 0x12d   :  { %3083 = vmatmul.mubr.f32.gmra.mrb[16].mxu1 %v4538_v20  ;;  %3278 = vmatmul.mubr.msk.f32.gmra.mrb[18].mxu0 %vm261_vm0, %v3995_v47 }
 0x12e   :  { %3085 = vmatprep.mubr.f32.mxu1 %v4539_v21  ;;  %3280 = vmatprep.mubr.msk.f32.mxu0 %vm261_vm0, %v4012_v61 }
 0x131   :  { %3086 = vmatmul.mubr.f32.gmra.mrb[18].mxu1 %v4540_v26  ;;  %3281 = vmatmul.mubr.msk.f32.gmra.mrb[20].mxu0 %vm261_vm0, %v4015_v62 }
 0x132   :  { %3088 = vmatprep.mubr.f32.mxu1 %v4541_v27  ;;  %3283 = vmatprep.mubr.msk.f32.mxu0 %vm261_vm0, %v4032_v52 }
 0x135   :  { %3089 = vmatmul.mubr.f32.gmra.mrb[20].mxu1 %v4542_v33  ;;  %3284 = vmatmul.mubr.msk.f32.gmra.mrb[22].mxu0 %vm261_vm0, %v4035_v19 }
 0x136   :  { %3091 = vmatprep.mubr.f32.mxu1 %v4543_v34  ;;  %3286 = vmatprep.mubr.msk.f32.mxu0 %vm261_vm0, %v4052_v58 }
 0x139   :  { %3092 = vmatmul.mubr.f32.gmra.mrb[22].mxu1 %v4544_v39  ;;  %3287 = vmatmul.mubr.msk.f32.gmra.mrb[24].mxu0 %vm261_vm0, %v4055_v8 }
 0x13a   :  { %3094 = vmatprep.mubr.f32.mxu1 %v4545_v40  ;;  %3289 = vmatprep.mubr.msk.f32.mxu0 %vm261_vm0, %v4072_v14 }
 0x13d   :  { %3095 = vmatmul.mubr.f32.gmra.mrb[24].mxu1 %v4546_v49  ;;  %3290 = vmatmul.mubr.msk.f32.gmra.mrb[26].mxu0 %vm261_vm0, %v4075_v0 }
 0x13e   :  { %3097 = vmatprep.mubr.f32.mxu1 %v4547_v50  ;;  %3292 = vmatprep.mubr.msk.f32.mxu0 %vm261_vm0, %v4092_v31 }
 0x141   :  { %3098 = vmatmul.mubr.f32.gmra.mrb[26].mxu1 %v4548_v56  ;;  %3293 = vmatmul.mubr.msk.f32.gmra.mrb[28].mxu0 %vm261_vm0, %v4095_v28 }
 0x142   :  { %3100 = vmatprep.mubr.f32.mxu1 %v4103_v60  ;;  %3295 = vmatprep.mubr.msk.f32.mxu0 %vm261_vm0, %v4112_v53 }
 0x145   :  { %3101 = vmatmul.mubr.f32.gmra.mrb[28].mxu1 %v4105_v16  ;;  %3296 = vmatmul.mubr.msk.f32.gmra.mrb[30].mxu0 %vm261_vm0, %v4115_v45  ;;  %vm2244_vm0 = vcmask 261120  }
 0x146   :  { %3103 = vmatprep.mubr.f32.mxu1 %v4123_v37 }
 0x149   :  { %3104 = vmatmul.mubr.f32.gmra.mrb[30].mxu1 %v4125_v32 }
 0x1dc   :  { %v3252_v57 = vpop.f32.mrb[0].mxu0 }
 0x1dd   :  { %v2038_v1 = vpop.f32.mrb[1].mxu0 }
 0x1e0   :  { %v3060_v23 = vpop.f32.mrb[0].mxu1  ;;  %v3255_v24 = vpop.f32.mrb[2].mxu0 }
 0x1e1   :  { %v3394_v43 = vadd.f32 %v3252_v57, %v3060_v23  ;;  %v1132_v46 = vpop.f32.mrb[1].mxu1  ;;  %v2050_v55 = vpop.f32.mrb[3].mxu0 }
 0x1e2   :  { %v3395_v4 = vadd.f32 %v2038_v1, %v1132_v46 }
 0x1e4   :  { %v3063_v2 = vpop.f32.mrb[2].mxu1  ;;  %v3258_v42 = vpop.f32.mrb[4].mxu0 }
 0x1e5   :  { %v3396_v63 = vadd.f32 %v3255_v24, %v3063_v2  ;;  %v1146_v12 = vpop.f32.mrb[3].mxu1  ;;  %v2062_v51 = vpop.f32.mrb[5].mxu0 }
 0x1e6   :  { %v3397_v47 = vadd.f32 %v2050_v55, %v1146_v12 }
 0x1e8   :  { %v3066_v61 = vpop.f32.mrb[4].mxu1  ;;  %v3261_v62 = vpop.f32.mrb[6].mxu0 }
 0x1e9   :  { %v4371_v52 = vadd.f32 %v3258_v42, %v3066_v61  ;;  %v1160_v19 = vpop.f32.mrb[5].mxu1  ;;  %v2074_v58 = vpop.f32.mrb[7].mxu0 }
 0x1ea   :  { %v4373_v8 = vadd.f32 %v2062_v51, %v1160_v19 }
 0x1ec   :  { %v3069_v14 = vpop.f32.mrb[6].mxu1  ;;  %v3264_v0 = vpop.f32.mrb[8].mxu0 }
 0x1ed   :  { %v4375_v35 = vadd.f32 %v3261_v62, %v3069_v14  ;;  %v1174_v5 = vpop.f32.mrb[7].mxu1  ;;  %v2086_v31 = vpop.f32.mrb[9].mxu0 }
 0x1ee   :  { %v4377_v28 = vadd.f32 %v2074_v58, %v1174_v5 }
 0x1f0   :  { %v3072_v60 = vpop.f32.mrb[8].mxu1  ;;  %v3267_v16 = vpop.f32.mrb[10].mxu0 }
 0x1f1   :  { %v4379_v53 = vadd.f32 %v3264_v0, %v3072_v60  ;;  %v1188_v45 = vpop.f32.mrb[9].mxu1  ;;  %v2098_v59 = vpop.f32.mrb[11].mxu0 }
 0x1f2   :  { %v4381_v48 = vadd.f32 %v2086_v31, %v1188_v45 }
 0x1f4   :  { %v3075_v30 = vpop.f32.mrb[10].mxu1  ;;  %v3270_v37 = vpop.f32.mrb[12].mxu0 }
 0x1f5   :  { %v4383_v32 = vadd.f32 %v3267_v16, %v3075_v30  ;;  %v1202_v54 = vpop.f32.mrb[11].mxu1  ;;  %v2110_v38 = vpop.f32.mrb[13].mxu0 }
 0x1f6   :  { %v4385_v29 = vadd.f32 %v2098_v59, %v1202_v54 }
 0x1f8   :  { %v3078_v36 = vpop.f32.mrb[12].mxu1  ;;  %v3273_v44 = vpop.f32.mrb[14].mxu0 }
 0x1f9   :  { %v4387_v41 = vadd.f32 %v3270_v37, %v3078_v36  ;;  %v1216_v3 = vpop.f32.mrb[13].mxu1  ;;  %v2122_v13 = vpop.f32.mrb[15].mxu0 }
 0x1fa   :  { %v4389_v15 = vadd.f32 %v2110_v38, %v1216_v3 }
 0x1fc   :  { %v3081_v22 = vpop.f32.mrb[14].mxu1  ;;  %v3276_v25 = vpop.f32.mrb[16].mxu0 }
 0x1fd   :  { %v4391_v6 = vadd.f32 %v3273_v44, %v3081_v22  ;;  %v1230_v7 = vpop.f32.mrb[15].mxu1  ;;  %v2134_v9 = vpop.f32.mrb[17].mxu0 }
 0x1fe   :  { %v4393_v10 = vadd.f32 %v2122_v13, %v1230_v7 }
 0x200   :  { %v3084_v11 = vpop.f32.mrb[16].mxu1  ;;  %v3279_v17 = vpop.f32.mrb[18].mxu0 }
 0x201   :  { %v3410_v18 = vadd.f32 %v3276_v25, %v3084_v11  ;;  %v1244_v20 = vpop.f32.mrb[17].mxu1  ;;  %v2146_v21 = vpop.f32.mrb[19].mxu0 }
 0x202   :  { %v3411_v26 = vadd.f32 %v2134_v9, %v1244_v20 }
 0x203   :  { %v2229_v27 = vmul.f32 %v3410_v18, %v3394_v43 }
 0x204   :  { %v3087_v33 = vpop.f32.mrb[18].mxu1  ;;  %v3282_v34 = vpop.f32.mrb[20].mxu0  ;;  %v2228_v39 = vmul.f32 %v3411_v26, %v3395_v4 }
 0x205   :  { %v3412_v40 = vadd.f32 %v3279_v17, %v3087_v33  ;;  %v1258_v49 = vpop.f32.mrb[19].mxu1  ;;  %v2158_v50 = vpop.f32.mrb[21].mxu0  ;;  %v2248_v56 = vsel %vm2244_vm0, %v2229_v27, 0.0 }
 0x206   :  { %v3413_v57 = vadd.f32 %v2146_v21, %v1258_v49  ;;  %2249 = vadd.xlane.f32.xlu1 %v2248_v56  ;;  %v2245_v1 = vsel %vm2244_vm0, %v2228_v39, 0.0 }
 0x207   :  { %2246 = vadd.xlane.f32.xlu0 %v2245_v1  ;;  %v2231_v23 = vmul.f32 %v3412_v40, %v3396_v63 }
 0x208   :  { %v3090_v24 = vpop.f32.mrb[20].mxu1  ;;  %v3285_v46 = vpop.f32.mrb[22].mxu0  ;;  %v2230_v55 = vmul.f32 %v3413_v57, %v3397_v47 }
 0x209   :  { %v3414_v2 = vadd.f32 %v3282_v34, %v3090_v24  ;;  %v1272_v42 = vpop.f32.mrb[21].mxu1  ;;  %v2170_v43 = vpop.f32.mrb[23].mxu0  ;;  %v2254_v12 = vsel %vm2244_vm0, %v2231_v23, 0.0 }
 0x20a   :  { %v3415_v4 = vadd.f32 %v2158_v50, %v1272_v42  ;;  %v2251_v5 = vsel %vm2244_vm0, %v2230_v55, 0.0 }
 0x20b   :  { %2255 = vadd.xlane.f32.xlu0 %v2254_v12  ;;  %v2233_v51 = vmul.f32 %v3414_v2, %v4371_v52 }
 0x20c   :  { %v3093_v61 = vpop.f32.mrb[22].mxu1  ;;  %v3288_v62 = vpop.f32.mrb[24].mxu0  ;;  %v2232_v19 = vmul.f32 %v3415_v4, %v4373_v8 }
 0x20d   :  { %v3416_v58 = vadd.f32 %v3285_v46, %v3093_v61  ;;  %v1286_v14 = vpop.f32.mrb[23].mxu1  ;;  %v2182_v0 = vpop.f32.mrb[25].mxu0  ;;  %v2260_v37 = vsel %vm2244_vm0, %v2233_v51, 0.0 }
 0x20e   :  { %v3417_v63 = vadd.f32 %v2170_v43, %v1286_v14  ;;  %v2257_v47 = vsel %vm2244_vm0, %v2232_v19, 0.0 }
 0x20f   :  { %2252 = vadd.xlane.f32.xlu0 %v2251_v5  ;;  %2258 = vadd.xlane.f32.xlu1 %v2257_v47  ;;  %v2235_v31 = vmul.f32 %v3416_v58, %v4375_v35 }
 0x210   :  { %v3096_v60 = vpop.f32.mrb[24].mxu1  ;;  %v3291_v16 = vpop.f32.mrb[26].mxu0  ;;  %v2234_v52 = vmul.f32 %v3417_v63, %v4377_v28 }
 0x211   :  { %v3418_v45 = vadd.f32 %v3288_v62, %v3096_v60  ;;  %v1300_v59 = vpop.f32.mrb[25].mxu1  ;;  %v2194_v30 = vpop.f32.mrb[27].mxu0  ;;  %v2266_v25 = vsel %vm2244_vm0, %v2235_v31, 0.0 }
 0x212   :  { %v3419_v8 = vadd.f32 %v2182_v0, %v1300_v59  ;;  %v2263_v54 = vsel %vm2244_vm0, %v2234_v52, 0.0 }
 0x213   :  { %2261 = vadd.xlane.f32.xlu0 %v2260_v37  ;;  %2264 = vadd.xlane.f32.xlu1 %v2263_v54  ;;  %v2237_v38 = vmul.f32 %v3418_v45, %v4379_v53 }
 0x214   :  { %v3099_v36 = vpop.f32.mrb[26].mxu1  ;;  %v3294_v44 = vpop.f32.mrb[28].mxu0  ;;  %v2236_v35 = vmul.f32 %v3419_v8, %v4381_v48 }
 0x215   :  { %v3420_v3 = vadd.f32 %v3291_v16, %v3099_v36  ;;  %v1314_v13 = vpop.f32.mrb[27].mxu1  ;;  %v2206_v22 = vpop.f32.mrb[29].mxu0  ;;  %v2272_v26 = vsel %vm2244_vm0, %v2237_v38, 0.0  ;;  %v4549_v36 = vld [vmem:[#allocation6_spill] sm:$0xff] }
 0x216   :  { %v3421_v28 = vadd.f32 %v2194_v30, %v1314_v13  ;;  %v2269_v7 = vsel %vm2244_vm0, %v2236_v35, 0.0 }
 0x217   :  { %2267 = vadd.xlane.f32.xlu0 %v2266_v25  ;;  %2270 = vadd.xlane.f32.xlu1 %v2269_v7  ;;  %v2239_v9 = vmul.f32 %v3420_v3, %v4383_v32  ;;  %v2423_v7 = vadd.s32 4294967272, %v4549_v36 }
 0x218   :  { %v3102_v11 = vpop.f32.mrb[28].mxu1  ;;  %v3297_v17 = vpop.f32.mrb[30].mxu0  ;;  %v2238_v53 = vmul.f32 %v3421_v28, %v4385_v29 }
 0x219   :  { %v3422_v18 = vadd.f32 %v3294_v44, %v3102_v11  ;;  %v1328_v20 = vpop.f32.mrb[29].mxu1  ;;  %v2218_v21 = vpop.f32.mrb[31].mxu0  ;;  %v2278_v29 = vsel %vm2244_vm0, %v2239_v9, 0.0  ;;  %v2409_v44 = vadd.s32 4294967288, %v4549_v36  ;;  %v2416_v11 = vadd.s32 4294967280, %v4549_v36 }
 0x21a   :  { %v3423_v48 = vadd.f32 %v2206_v22, %v1328_v20  ;;  %v2275_v27 = vsel %vm2244_vm0, %v2238_v53, 0.0  ;;  %v4550_v53 = vld [vmem:[#allocation5_spill] sm:$0xff] }
 0x21b   :  { %2273 = vadd.xlane.f32.xlu0 %v2272_v26  ;;  %2276 = vadd.xlane.f32.xlu1 %v2275_v27  ;;  %v2241_v33 = vmul.f32 %v3422_v18, %v4387_v41  ;;  %v2412_v18 = vsub.s32 %v2409_v44, %v4550_v53  ;;  %v2407_v20 = vsub.s32 %v4549_v36, %v4550_v53 }
 0x21c   :  { %v3105_v34 = vpop.f32.mrb[30].mxu1  ;;  %v2240_v39 = vmul.f32 %v3423_v48, %v4389_v15 }
 0x21d   :  { %v3424_v32 = vadd.f32 %v3297_v17, %v3105_v34  ;;  %v1342_v40 = vpop.f32.mrb[31].mxu1  ;;  %v2284_v1 = vsel %vm2244_vm0, %v2241_v33, 0.0 }
 0x21e   :  { %v3425_v49 = vadd.f32 %v2218_v21, %v1342_v40  ;;  %v2281_v50 = vsel %vm2244_vm0, %v2240_v39, 0.0  ;;  %v2426_v39 = vsub.s32 %v2423_v7, %v4550_v53 }
 0x21f   :  { %2279 = vadd.xlane.f32.xlu0 %v2278_v29  ;;  %2282 = vadd.xlane.f32.xlu1 %v2281_v50  ;;  %v2243_v56 = vmul.f32 %v3424_v32, %v4391_v6  ;;  %v2430_v32 = vadd.s32 4294967264, %v4549_v36  ;;  %v2419_v29 = vsub.s32 %v2416_v11, %v4550_v53  ;;  %v2437_v50 = vadd.s32 4294967256, %v4549_v36 }
 0x220   :  { %v2242_v57 = vmul.f32 %v3425_v49, %v4393_v10 }
 0x221   :  { %v2290_v15 = vsel %vm2244_vm0, %v2243_v56, 0.0 }
 0x222   :  { %v2287_v41 = vsel %vm2244_vm0, %v2242_v57, 0.0 }
 0x223   :  { %2285 = vadd.xlane.f32.xlu0 %v2284_v1  ;;  %2288 = vadd.xlane.f32.xlu1 %v2287_v41 }
 0x227   :  { %2291 = vadd.xlane.f32.xlu0 %v2290_v15 }
 0x293   :  { %v2250_v23 = vpop.xlane.xlu1 %2249 }
 0x294   :  { %v2659_v24 = vmul.f32 -1.442695, %v2250_v23  ;;  %v2247_v46 = vpop.xlane.xlu0 %2246 }
 0x295   :  { %v2658_v55 = vmul.f32 -1.442695, %v2247_v46  ;;  %v2444_v46 = vadd.s32 4294967248, %v4549_v36 }
 0x296   :  { %3556 = vpow2.f32 %v2659_v24 }
 0x297   :  { %3558 = vpow2.f32 %v2658_v55 }
 0x298   :  { %v2256_v2 = vpop.xlane.xlu0 %2255 }
 0x299   :  { %v2661_v42 = vmul.f32 -1.442695, %v2256_v2 }
 0x29b   :  { %3560 = vpow2.f32 %v2661_v42  ;;  %v2433_v42 = vsub.s32 %v2430_v32, %v4550_v53 }
 0x29c   :  { %v2253_v6 = vpop.xlane.xlu0 %2252  ;;  %v2259_v10 = vpop.xlane.xlu1 %2258 }
 0x29d   :  { %v2660_v43 = vmul.f32 -1.442695, %v2253_v6  ;;  %v2662_v12 = vmul.f32 -1.442695, %v2259_v10 }
 0x29f   :  { %3562 = vpow2.f32 %v2660_v43 }
 0x2a0   :  { %v3557_v4 = vpop.eup %3556  ;;  %3564 = vpow2.f32 %v2662_v12  ;;  %v2262_v51 = vpop.xlane.xlu0 %2261  ;;  %v2451_v12 = vadd.s32 4294967240, %v4549_v36 }
 0x2a1   :  { %v2265_v61 = vpop.xlane.xlu1 %2264  ;;  %v3559_v62 = vpop.eup %3558  ;;  %v2342_v19 = vadd.f32 1.0, %v3557_v4  ;;  %v2663_v58 = vmul.f32 -1.442695, %v2262_v51 }
 0x2a2   :  { %v2341_v14 = vadd.f32 1.0, %v3559_v62  ;;  %v2664_v0 = vmul.f32 -1.442695, %v2265_v61  ;;  %v2440_v62 = vsub.s32 %v2437_v50, %v4550_v53 }
 0x2a3   :  { %3566 = vrcp.f32 %v2342_v19 }
 0x2a4   :  { %3568 = vrcp.f32 %v2341_v14  ;;  %v2268_v63 = vpop.xlane.xlu0 %2267  ;;  %v2447_v14 = vsub.s32 %v2444_v46, %v4550_v53  ;;  %v2507_v46 = vadd.s32 4294967176, %v4549_v36 }
 0x2a5   :  { %v2271_v5 = vpop.xlane.xlu1 %2270  ;;  %v3561_v47 = vpop.eup %3560  ;;  %3570 = vpow2.f32 %v2663_v58  ;;  %v2665_v31 = vmul.f32 -1.442695, %v2268_v63 }
 0x2a6   :  { %v2666_v60 = vmul.f32 -1.442695, %v2271_v5  ;;  %v2344_v16 = vadd.f32 1.0, %v3561_v47  ;;  %3572 = vpow2.f32 %v2664_v0 }
 0x2a7   :  { %3574 = vpow2.f32 %v2665_v31  ;;  %v2458_v31 = vadd.s32 4294967232, %v4549_v36 }
 0x2a8   :  { %v2274_v52 = vpop.xlane.xlu0 %2273  ;;  %3576 = vpow2.f32 %v2666_v60 }
 0x2a9   :  { %v2277_v45 = vpop.xlane.xlu1 %2276  ;;  %v3563_v59 = vpop.eup %3562  ;;  %v2667_v30 = vmul.f32 -1.442695, %v2274_v52  ;;  %3578 = vrcp.f32 %v2344_v16  ;;  %v2454_v16 = vsub.s32 %v2451_v12, %v4550_v53  ;;  %v2465_v52 = vadd.s32 4294967224, %v4549_v36 }
 0x2aa   :  { %v3565_v8 = vpop.eup %3564  ;;  %v2343_v37 = vadd.f32 1.0, %v3563_v59  ;;  %v2668_v54 = vmul.f32 -1.442695, %v2277_v45  ;;  %v2510_v12 = vsub.s32 %v2507_v46, %v4550_v53 }
 0x2ab   :  { %v2345_v38 = vadd.f32 1.0, %v3565_v8  ;;  %3580 = vpow2.f32 %v2667_v30 }
 0x2ac   :  { %3582 = vrcp.f32 %v2343_v37  ;;  %v2280_v35 = vpop.xlane.xlu0 %2279 }
 0x2ad   :  { %v2283_v3 = vpop.xlane.xlu1 %2282  ;;  %v3567_v13 = vpop.eup %3566  ;;  %3584 = vrcp.f32 %v2345_v38  ;;  %v2669_v22 = vmul.f32 -1.442695, %v2280_v35  ;;  %v2461_v35 = vsub.s32 %v2458_v31, %v4550_v53 }
 0x2ae   :  { %v2670_v28 = vmul.f32 -1.442695, %v2283_v3  ;;  %v3569_v25 = vpop.eup %3568  ;;  %3586 = vpow2.f32 %v2668_v54  ;;  %v2413_v1 = vrot.slane %v3567_v13, %v2412_v18  ;;  %v2472_v54 = vadd.s32 4294967216, %v4549_v36 }
 0x2af   :  { %v3571_v9 = vpop.eup %3570  ;;  %3588 = vpow2.f32 %v2669_v22  ;;  %v2408_v41 = vrot.slane %v3569_v25, %v2407_v20  ;;  %v2479_v25 = vadd.s32 4294967208, %v4549_v36  ;;  %v2486_v18 = vadd.s32 4294967200, %v4549_v36 }
 0x2b0   :  { %v3573_v17 = vpop.eup %3572  ;;  %v2346_v21 = vadd.f32 1.0, %v3571_v9  ;;  %3590 = vpow2.f32 %v2670_v28  ;;  %v2286_v48 = vpop.xlane.xlu0 %2285  ;;  %v2468_v28 = vsub.s32 %v2465_v52, %v4550_v53 }
 0x2b1   :  { %v2289_v26 = vpop.xlane.xlu1 %2288  ;;  %v3575_v27 = vpop.eup %3574  ;;  %v2347_v33 = vadd.f32 1.0, %v3573_v17  ;;  %v2671_v34 = vmul.f32 -1.442695, %v2286_v48  ;;  %v2415_v51 = vsel %vm2414_vm3, %v2413_v1, %v2408_v41  ;;  %v2475_v17 = vsub.s32 %v2472_v54, %v4550_v53 }
 0x2b2   :  { %3592 = vrcp.f32 %v2346_v21  ;;  %v2348_v40 = vadd.f32 1.0, %v3575_v27  ;;  %v3577_v49 = vpop.eup %3576  ;;  %v2672_v56 = vmul.f32 -1.442695, %v2289_v26 }
 0x2b3   :  { %3594 = vrcp.f32 %v2347_v33  ;;  %v3579_v57 = vpop.eup %3578  ;;  %v2349_v15 = vadd.f32 1.0, %v3577_v49  ;;  %v2493_v49 = vadd.s32 4294967192, %v4549_v36 }
 0x2b4   :  { %3596 = vrcp.f32 %v2348_v40  ;;  %v2292_v23 = vpop.xlane.xlu0 %2291  ;;  %v2427_v61 = vrot.slane %v3579_v57, %v2426_v39  ;;  %v2482_v39 = vsub.s32 %v2479_v25, %v4550_v53  ;;  %v2489_v57 = vsub.s32 %v2486_v18, %v4550_v53 }
 0x2b5   :  { %v3581_v24 = vpop.eup %3580  ;;  %3598 = vpow2.f32 %v2671_v34  ;;  %v2673_v55 = vmul.f32 -1.442695, %v2292_v23  ;;  %v2500_v23 = vadd.s32 4294967184, %v4549_v36 }
 0x2b6   :  { %v3583_v2 = vpop.eup %3582  ;;  %3600 = vrcp.f32 %v2349_v15  ;;  %v2350_v6 = vadd.f32 1.0, %v3581_v24  ;;  %v2496_v24 = vsub.s32 %v2493_v49, %v4550_v53 }
 0x2b7   :  { %v3585_v10 = vpop.eup %3584  ;;  %v2420_v43 = vrot.slane %v3583_v2, %v2419_v29  ;;  %3602 = vpow2.f32 %v2672_v56 }
 0x2b8   :  { %v3587_v4 = vpop.eup %3586  ;;  %3604 = vrcp.f32 %v2350_v6  ;;  %v2434_v47 = vrot.slane %v3585_v10, %v2433_v42  ;;  %v2503_v6 = vsub.s32 %v2500_v23, %v4550_v53 }
 0x2b9   :  { %v3589_v19 = vpop.eup %3588  ;;  %v2422_v58 = vsel %vm2421_vm4, %v2420_v43, %v2415_v51  ;;  %v2351_v0 = vadd.f32 1.0, %v3587_v4  ;;  %3606 = vpow2.f32 %v2673_v55 }
 0x2ba   :  { %v3591_v63 = vpop.eup %3590  ;;  %v2429_v5 = vsel %vm2428_vm5, %v2427_v61, %v2422_v58  ;;  %v2352_v60 = vadd.f32 1.0, %v3589_v19 }
 0x2bb   :  { %3608 = vrcp.f32 %v2351_v0  ;;  %v2353_v45 = vadd.f32 1.0, %v3591_v63  ;;  %v2436_v30 = vsel %vm2435_vm6, %v2434_v47, %v2429_v5 }
 0x2bc   :  { %v3593_v59 = vpop.eup %3592  ;;  %3610 = vrcp.f32 %v2352_v60 }
 0x2bd   :  { %v3595_v8 = vpop.eup %3594  ;;  %v2441_v37 = vrot.slane %v3593_v59, %v2440_v62  ;;  %3612 = vrcp.f32 %v2353_v45 }
 0x2be   :  { %v3597_v38 = vpop.eup %3596  ;;  %v2448_v44 = vrot.slane %v3595_v8, %v2447_v14 }
 0x2bf   :  { %v3599_v3 = vpop.eup %3598  ;;  %v2443_v13 = vsel %vm2442_vm7, %v2441_v37, %v2436_v30  ;;  %v2455_v22 = vrot.slane %v3597_v38, %v2454_v16 }
 0x2c0   :  { %v3601_v7 = vpop.eup %3600  ;;  %v2354_v9 = vadd.f32 1.0, %v3599_v3  ;;  %v2450_v21 = vsel %vm2449_vm8, %v2448_v44, %v2443_v13 }
 0x2c1   :  { %v3603_v11 = vpop.eup %3602  ;;  %v2462_v48 = vrot.slane %v3601_v7, %v2461_v35  ;;  %v2457_v33 = vsel %vm2456_vm9, %v2455_v22, %v2450_v21 }
 0x2c2   :  { %v3605_v20 = vpop.eup %3604  ;;  %3614 = vrcp.f32 %v2354_v9  ;;  %v2355_v26 = vadd.f32 1.0, %v3603_v11 }
 0x2c3   :  { %v3607_v27 = vpop.eup %3606  ;;  %v2469_v34 = vrot.slane %v3605_v20, %v2468_v28  ;;  %v2464_v56 = vsel %vm2463_vm10, %v2462_v48, %v2457_v33 }
 0x2c4   :  { %3616 = vrcp.f32 %v2355_v26  ;;  %v2356_v32 = vadd.f32 1.0, %v3607_v27 }
 0x2c5   :  { %v3609_v40 = vpop.eup %3608  ;;  %v2471_v15 = vsel %vm2470_vm11, %v2469_v34, %v2464_v56 }
 0x2c6   :  { %v3611_v29 = vpop.eup %3610  ;;  %v2476_v50 = vrot.slane %v3609_v40, %v2475_v17  ;;  %3618 = vrcp.f32 %v2356_v32 }
 0x2c7   :  { %v3613_v1 = vpop.eup %3612  ;;  %v2483_v41 = vrot.slane %v3611_v29, %v2482_v39 }
 0x2c8   :  { %v2478_v55 = vsel %vm2477_vm12, %v2476_v50, %v2471_v15  ;;  %v2490_v2 = vrot.slane %v3613_v1, %v2489_v57 }
 0x2c9   :  { %v2485_v42 = vsel %vm2484_vm13, %v2483_v41, %v2478_v55 }
 0x2ca   :  { %v2492_v51 = vsel %vm2491_vm14, %v2490_v2, %v2485_v42 }
 0x2cc   :  { %v3615_v10 = vpop.eup %3614 }
 0x2cd   :  { %v2497_v43 = vrot.slane %v3615_v10, %v2496_v24 }
 0x2ce   :  { %v3617_v4 = vpop.eup %3616 }
 0x2cf   :  { %v2499_v61 = vsel %vm2498_vm15, %v2497_v43, %v2492_v51  ;;  %v2504_v62 = vrot.slane %v3617_v4, %v2503_v6 }
 0x2d0   :  { %v3619_v19 = vpop.eup %3618 }
 0x2d1   :  { %v2511_v36 = vrot.slane %v3619_v19, %v2510_v12  ;;  %v2506_v58 = vsel %vm2505_vm1, %v2504_v62, %v2499_v61 }
 0x2d3   :  { %v2513_v14 = vsel %vm2512_vm2, %v2511_v36, %v2506_v58 }
 0x2d4   :  { %2515 = vst [vmem:[#allocation2] sm:$0x1] %v2513_v14 }
 0x2d5   :  { %3631 = shalt.err (!%p3628_p4)
}
 0x2d6   :  { %s3632_s3 = scalar_lea.hbm %s4473_s2, 16 }
 0x2d7   :  { %p3633_p5 = scmp.ne.s32.totalorder %s4473_s2, %s3632_s3  ;;  %p3636_p6 = scmp.lt.u32.totalorder %s3632_s3, %s4473_s2 }
 0x2d9   :  { %p3638_p7 = pnand %p3636_p6, %p3633_p5 }
 0x2db   :  { %3641 = shalt.err (!%p3638_p7)
}
 0x2dc   :  { %2525 = dma.vmem_to_hbm [thread:$0]  %s2523_s26, 16, %s4473_s2, [#allocation3]  }
 0x2dd   :  { %3642 = dma.done.wait [#allocation3], 16  }
 0x2de   :  { %3643 = vsyncadd [#allocation3], 4294967280 }
 0x2df   :  { %2529 = vsyncpa [#allocation3], 1 }

</bundles_post_ra>
